<compile_context>
chip_gen: v7x
topology: tpu7x:2x2x1
jax: 0.10.0
libtpu: 0.0.40
codegen_flags: <defaults>
</compile_context>

<pallas_src>
import functools
import math

import jax
import jax.numpy as jnp
from jax import lax
from jax.experimental import pallas as pl
from jax.experimental.pallas import tpu as pltpu

TEMPERATURE = 0.07
BASE_TEMPERATURE = 0.07

_NEG_BIG = -1e30


def _supcon_tile_kernel(rlab_ref, clab_ref, frow_ref, fcol_ref, out_ref,
                        m_sc, l_sc, s_sc, c_sc, *,
                        n_valid, n_padded, block_m, block_n,
                        col_resident, loss_scale):
    """One (row-block i, col-block j) tile of the SupCon forward.

    rlab_ref: [BM, 1]    int32 labels of the anchor rows
    clab_ref: [1, Np]    int32 labels of ALL contrast columns (VMEM-resident)
    frow_ref: [BM, Dp]   f32 anchor features   (pre-scaled by 1/sqrt(T))
    fcol_ref: [BN, Dp] or [Np, Dp] f32 contrast features (pre-scaled by 1/sqrt(T))
    out_ref : [BM, 1]    f32 per-row loss (written at the last column block)
    scratch : m_sc (running row max), l_sc (running sum exp), s_sc (running
              sum of pos*adc), c_sc (running positive count), all [BM, 1] f32.
    """
    i = pl.program_id(0)
    j = pl.program_id(1)
    nj = pl.num_programs(1)
    neg_big = jnp.float32(_NEG_BIG)
    has_padding = (n_valid != n_padded)          # static Python bool

    @pl.when(j == 0)
    def _():
        m_sc[...] = jnp.full(m_sc.shape, neg_big, jnp.float32)
        l_sc[...] = jnp.zeros(l_sc.shape, jnp.float32)
        s_sc[...] = jnp.zeros(s_sc.shape, jnp.float32)
        c_sc[...] = jnp.zeros(c_sc.shape, jnp.float32)

    col_start = pl.multiple_of(j * block_n, block_n)
    if col_resident:
        fcol = fcol_ref[pl.ds(col_start, block_n), :]
    else:
        fcol = fcol_ref[...]
    clab = clab_ref[:, pl.ds(col_start, block_n)]      # [1, BN], resident slice
    rlab = rlab_ref[...]                               # [BM, 1]

    # adc[a, b] = f_a . f_b / T   (1/T folded into the feature scaling)
    adc = lax.dot_general(
        frow_ref[...], fcol,
        dimension_numbers=(((1,), (1,)), ((), ())),
        preferred_element_type=jnp.float32)

    m_prev = m_sc[...]

    # Only diagonal tiles and (when padding exists) the last column block need
    # any index masking; everything else takes the mask-free fast path.
    needs_mask = (i == j)
    if has_padding:
        needs_mask = needs_mask | (j == nj - 1)

    def masked_path(adc, m_prev):
        # 1-D iotas + broadcast compares (no full [BM,BN] iotas / int adds).
        row_g = i * block_m + lax.broadcasted_iota(jnp.int32, (block_m, 1), 0)
        col_g = col_start + lax.broadcasted_iota(jnp.int32, (1, block_n), 1)
        not_diag = row_g != col_g                              # [BM, BN]
        if has_padding:
            valid_col = col_g < n_valid                        # [1, BN]
            lmask = not_diag & valid_col
            adc_for_max = jnp.where(valid_col, adc, neg_big)   # max keeps diag
        else:
            lmask = not_diag
            adc_for_max = adc
        m_new = jnp.maximum(m_prev, jnp.max(adc_for_max, axis=1, keepdims=True))
        p = jnp.where(lmask, jnp.exp(adc - m_new), 0.0)
        pos_f = ((rlab == clab) & lmask).astype(jnp.float32)
        return (m_new,
                jnp.sum(p, axis=1, keepdims=True),
                jnp.sum(pos_f * adc, axis=1, keepdims=True),
                jnp.sum(pos_f, axis=1, keepdims=True))

    def fast_path(adc, m_prev):
        m_new = jnp.maximum(m_prev, jnp.max(adc, axis=1, keepdims=True))
        p = jnp.exp(adc - m_new)
        pos_f = (rlab == clab).astype(jnp.float32)
        return (m_new,
                jnp.sum(p, axis=1, keepdims=True),
                jnp.sum(pos_f * adc, axis=1, keepdims=True),
                jnp.sum(pos_f, axis=1, keepdims=True))

    m_new, p_sum, s_sum, c_sum = lax.cond(needs_mask, masked_path, fast_path,
                                          adc, m_prev)

    # Online-softmax running-state update.
    alpha = jnp.exp(m_prev - m_new)
    l_sc[...] = alpha * l_sc[...] + p_sum
    s_sc[...] = s_sc[...] + s_sum
    c_sc[...] = c_sc[...] + c_sum
    m_sc[...] = m_new

    @pl.when(j == nj - 1)
    def _():
        # log_denom = logits_max + log(sum_j exp(adc - logits_max) * logits_mask)
        log_denom = m_sc[...] + jnp.log(l_sc[...])
        cnt = c_sc[...]
        safe_cnt = jnp.maximum(cnt, 1.0)     # padded / positive-free rows -> 0, not NaN
        # sum_j mask * log_prob = sum_j mask * adc - cnt * log_denom
        mean_log_prob_pos = (s_sc[...] - cnt * log_denom) / safe_cnt
        out_ref[...] = -loss_scale * mean_log_prob_pos


def supcon_loss_pallas(features, labels,
                       temperature=TEMPERATURE, base_temperature=BASE_TEMPERATURE):
    """features: [bsz, n_views, dim]; labels: [bsz] int. Returns scalar f32 loss."""
    bsz, n_views, dim = features.shape
    n_total = bsz * n_views

    # torch.cat(torch.unbind(features, dim=1), dim=0)  -> view-major [N, D]
    contrast_feature = jnp.transpose(features, (1, 0, 2)).reshape(n_total, dim)
    contrast_feature = contrast_feature.astype(jnp.float32)
    # Fold 1/temperature into both matmul operands: (f/sqrt(T)).(g/sqrt(T)) = f.g/T
    feat_scaled = contrast_feature * jnp.float32(1.0 / math.sqrt(temperature))

    # Tile selection: big tiles amortize the ~0.35 us/step overhead and cut
    # contrast re-streaming, but keep >= 2 row blocks so the "parallel" row
    # axis can feed both v7x TensorCores.
    block = 128
    for cand in (256, 512):
        if n_total >= 2 * cand:
            block = cand
    n_pad = ((n_total + block - 1) // block) * block
    d_pad = ((dim + 127) // 128) * 128

    feat_p = jnp.zeros((n_pad, d_pad), jnp.float32).at[:n_total, :dim].set(feat_scaled)

    labels_full = jnp.tile(labels.astype(jnp.int32), (n_views,))   # view-major
    # NOTE: -1 sentinel assumed never to be a real label (padded cols are also
    # excluded explicitly via the valid_col mask).
    labels_p = jnp.full((n_pad,), -1, jnp.int32).at[:n_total].set(labels_full)
    rlab = labels_p.reshape(n_pad, 1)
    clab = labels_p.reshape(1, n_pad)

    grid = (n_pad // block, n_pad // block)

    # Hold the full contrast matrix VMEM-resident when small: removes the
    # dominant HBM traffic (contrast matrix otherwise re-streamed grid[0] times).
    col_resident = (n_pad * d_pad * 4) <= (8 * 1024 * 1024)
    if col_resident:
        fcol_spec = pl.BlockSpec((n_pad, d_pad), lambda i, j: (0, 0))
    else:
        fcol_spec = pl.BlockSpec((block, d_pad), lambda i, j: (j, 0))

    kernel = functools.partial(
        _supcon_tile_kernel,
        n_valid=n_total, n_padded=n_pad,
        block_m=block, block_n=block,
        col_resident=col_resident,
        loss_scale=float(temperature / base_temperature))

    # VMEM budget: feature double buffers + resident contrast copy + tile temps.
    feat_bufs = 2 * 2 * block * d_pad * 4
    resident = (2 * n_pad * d_pad * 4) if col_resident else 0
    temps = 8 * block * block * 4
    vmem_limit = int(min(max(feat_bufs + resident + temps + (1 << 20),
                             32 * 1024 * 1024),
                         64 * 1024 * 1024))

    per_row = pl.pallas_call(
        kernel,
        out_shape=jax.ShapeDtypeStruct((n_pad, 1), jnp.float32),
        grid_spec=pltpu.PrefetchScalarGridSpec(
            num_scalar_prefetch=0,
            grid=grid,
            in_specs=[
                pl.BlockSpec((block, 1), lambda i, j: (i, 0)),       # row labels
                pl.BlockSpec((1, n_pad), lambda i, j: (0, 0)),       # col labels (resident)
                pl.BlockSpec((block, d_pad), lambda i, j: (i, 0)),   # anchor features
                fcol_spec,                                           # contrast features
            ],
            out_specs=pl.BlockSpec((block, 1), lambda i, j: (i, 0)),
            scratch_shapes=[pltpu.VMEM((block, 1), jnp.float32)] * 4,
        ),
        compiler_params=pltpu.CompilerParams(
            dimension_semantics=("parallel", "arbitrary"),
            vmem_limit_bytes=vmem_limit),
    )(rlab, clab, feat_p, feat_p)

    # loss.view(anchor_count, bsz).mean() == mean over all N real rows.
    return jnp.mean(per_row[:n_total, 0])


def supcon_loss_ref(features, labels,
                    temperature=TEMPERATURE, base_temperature=BASE_TEMPERATURE):
    """Pure-JAX reference mirroring the PyTorch forward exactly."""
    bsz, n_views, dim = features.shape
    n_total = bsz * n_views
    labels_col = labels.reshape(-1, 1)
    mask = (labels_col == labels_col.T).astype(jnp.float32)
    contrast_feature = jnp.transpose(features, (1, 0, 2)).reshape(n_total, dim)
    anchor_feature = contrast_feature
    adc = jnp.matmul(anchor_feature, contrast_feature.T) / temperature
    logits_max = jnp.max(adc, axis=1, keepdims=True)
    logits = adc - logits_max
    mask = jnp.tile(mask, (n_views, n_views))
    logits_mask = 1.0 - jnp.eye(n_total, dtype=jnp.float32)
    mask = mask * logits_mask
    exp_logits = jnp.exp(logits) * logits_mask
    log_prob = logits - jnp.log(jnp.sum(exp_logits, axis=1, keepdims=True))
    mean_log_prob_pos = jnp.sum(mask * log_prob, axis=1) / jnp.sum(mask, axis=1)
    loss = -(temperature / base_temperature) * mean_log_prob_pos
    return jnp.mean(loss.reshape(n_views, bsz))


if __name__ == "__main__":
    key = jax.random.PRNGKey(0)

    # --- Test 1: small, single-tile (grid 1x1, row+col padding) ---------------
    k_feat, k_lbl = jax.random.split(key)
    bsz, n_views, dim = 8, 2, 32
    feats = jax.random.normal(k_feat, (bsz, n_views, dim), dtype=jnp.float32)
    feats = feats / jnp.linalg.norm(feats, axis=-1, keepdims=True)
    labels = jax.random.randint(k_lbl, (bsz,), 0, 4, dtype=jnp.int32)

    loss = supcon_loss_pallas(feats, labels)
    jax.block_until_ready(loss)
    ref = supcon_loss_ref(feats, labels)
    assert jnp.allclose(loss, ref, rtol=1e-4, atol=1e-4), (loss, ref)

    # --- Test 2: 2x2 grid with padding (N=192 -> 256): exercises diag cond,
    #             padded-column cond and the mask-free fast path ---------------
    k_feat2, k_lbl2 = jax.random.split(jax.random.PRNGKey(1))
    bsz2, n_views2, dim2 = 96, 2, 32
    feats2 = jax.random.normal(k_feat2, (bsz2, n_views2, dim2), dtype=jnp.float32)
    feats2 = feats2 / jnp.linalg.norm(feats2, axis=-1, keepdims=True)
    labels2 = jax.random.randint(k_lbl2, (bsz2,), 0, 10, dtype=jnp.int32)

    loss2 = supcon_loss_pallas(feats2, labels2)
    jax.block_until_ready(loss2)
    ref2 = supcon_loss_ref(feats2, labels2)
    assert jnp.allclose(loss2, ref2, rtol=1e-3, atol=1e-3), (loss2, ref2)

    # --- Test 3: 2x2 grid, no padding (N=256): static has_padding=False path --
    k_feat3, k_lbl3 = jax.random.split(jax.random.PRNGKey(2))
    bsz3, n_views3, dim3 = 128, 2, 64
    feats3 = jax.random.normal(k_feat3, (bsz3, n_views3, dim3), dtype=jnp.float32)
    feats3 = feats3 / jnp.linalg.norm(feats3, axis=-1, keepdims=True)
    labels3 = jax.random.randint(k_lbl3, (bsz3,), 0, 10, dtype=jnp.int32)

    loss3 = supcon_loss_pallas(feats3, labels3)
    jax.block_until_ready(loss3)
    ref3 = supcon_loss_ref(feats3, labels3)
    assert jnp.allclose(loss3, ref3, rtol=1e-3, atol=1e-3), (loss3, ref3)

    print("KERNEL_OK")
</pallas_src>

<mosaic_0001>
module attributes {stable_mosaic.version = 11 : i64} {
  func.func @_supcon_tile_kernel(%arg0: i32, %arg1: i32, %arg2: memref<128x1xi32, #tpu.memory_space<vmem>>, %arg3: memref<1x128xi32, #tpu.memory_space<vmem>>, %arg4: memref<128x128xf32, #tpu.memory_space<vmem>>, %arg5: memref<128x128xf32, #tpu.memory_space<vmem>>, %arg6: memref<128x1xf32, #tpu.memory_space<vmem>>, %arg7: memref<128x1xf32, #tpu.memory_space<vmem>>, %arg8: memref<128x1xf32, #tpu.memory_space<vmem>>, %arg9: memref<128x1xf32, #tpu.memory_space<vmem>>, %arg10: memref<128x1xf32, #tpu.memory_space<vmem>>) attributes {dimension_semantics = [#tpu.dimension_semantics<parallel>, #tpu.dimension_semantics<arbitrary>], iteration_bounds = array<i64: 1, 1>, scalar_prefetch = 0 : i64, scratch_operands = 4 : i64, tpu.core_type = #tpu.core_type<tc>, window_params = [{transform_indices = @transform_0, window_bounds = array<i64: 128, 1>}, {pipeline_mode = #tpu.pipeline_mode<synchronous>, transform_indices = @transform_1, window_bounds = array<i64: 1, 128>}, {transform_indices = @transform_2, window_bounds = array<i64: 128, 128>}, {pipeline_mode = #tpu.pipeline_mode<synchronous>, transform_indices = @transform_3, window_bounds = array<i64: 128, 128>}, {transform_indices = @transform_4, window_bounds = array<i64: 128, 1>}]} {
    %c0_i32 = arith.constant 0 : i32
    %0 = arith.cmpi eq, %arg1, %c0_i32 : i32
    %1 = arith.extui %0 : i1 to i32
    %cst = arith.constant -1.000000e+30 : f32
    %c0_i32_0 = arith.constant 0 : i32
    %2 = arith.cmpi ne, %1, %c0_i32_0 : i32
    scf.if %2 {
      %35 = vector.broadcast %cst : f32 to vector<128x1xf32>
      %c0_28 = arith.constant 0 : index
      %c0_29 = arith.constant 0 : index
      %36 = vector.load %arg7[%c0_28, %c0_29] : memref<128x1xf32, #tpu.memory_space<vmem>>, vector<128x1xf32>
      tpu.vector_store %arg7[%c0_28, %c0_29], %35 {strides = array<i32>} : memref<128x1xf32, #tpu.memory_space<vmem>>, vector<128x1xf32>,
      %cst_30 = arith.constant 0.000000e+00 : f32
      %37 = vector.broadcast %cst_30 : f32 to vector<128x1xf32>
      %c0_31 = arith.constant 0 : index
      %c0_32 = arith.constant 0 : index
      %38 = vector.load %arg8[%c0_31, %c0_32] : memref<128x1xf32, #tpu.memory_space<vmem>>, vector<128x1xf32>
      tpu.vector_store %arg8[%c0_31, %c0_32], %37 {strides = array<i32>} : memref<128x1xf32, #tpu.memory_space<vmem>>, vector<128x1xf32>,
      %cst_33 = arith.constant 0.000000e+00 : f32
      %39 = vector.broadcast %cst_33 : f32 to vector<128x1xf32>
      %c0_34 = arith.constant 0 : index
      %c0_35 = arith.constant 0 : index
      %40 = vector.load %arg9[%c0_34, %c0_35] : memref<128x1xf32, #tpu.memory_space<vmem>>, vector<128x1xf32>
      tpu.vector_store %arg9[%c0_34, %c0_35], %39 {strides = array<i32>} : memref<128x1xf32, #tpu.memory_space<vmem>>, vector<128x1xf32>,
      %cst_36 = arith.constant 0.000000e+00 : f32
      %41 = vector.broadcast %cst_36 : f32 to vector<128x1xf32>
      %c0_37 = arith.constant 0 : index
      %c0_38 = arith.constant 0 : index
      %42 = vector.load %arg10[%c0_37, %c0_38] : memref<128x1xf32, #tpu.memory_space<vmem>>, vector<128x1xf32>
      tpu.vector_store %arg10[%c0_37, %c0_38], %41 {strides = array<i32>} : memref<128x1xf32, #tpu.memory_space<vmem>>, vector<128x1xf32>,
    } else {
    }
    %c128_i32 = arith.constant 128 : i32
    %3 = arith.muli %arg1, %c128_i32 : i32
    %4 = tpu.assume_multiple %3, 128 : i32
    %5 = arith.index_cast %4 : i32 to index
    %c0 = arith.constant 0 : index
    %6 = vector.load %arg5[%5, %c0] : memref<128x128xf32, #tpu.memory_space<vmem>>, vector<128x128xf32>
    %c0_1 = arith.constant 0 : index
    %7 = arith.index_cast %4 : i32 to index
    %8 = vector.load %arg3[%c0_1, %7] : memref<1x128xi32, #tpu.memory_space<vmem>>, vector<1x128xi32>
    %c0_2 = arith.constant 0 : index
    %c0_3 = arith.constant 0 : index
    %9 = vector.load %arg2[%c0_2, %c0_3] : memref<128x1xi32, #tpu.memory_space<vmem>>, vector<128x1xi32>
    %c0_4 = arith.constant 0 : index
    %c0_5 = arith.constant 0 : index
    %10 = vector.load %arg4[%c0_4, %c0_5] : memref<128x128xf32, #tpu.memory_space<vmem>>, vector<128x128xf32>
    %cst_6 = arith.constant dense<0.000000e+00> : vector<128x128xf32>
    %11 = tpu.matmul %10, %6, %cst_6 {dimension_numbers = #tpu.dot_dimension_numbers<[1], [1], [0], [0], [0, 0, 1, 0], [], []>} : vector<128x128xf32>, vector<128x128xf32>, vector<128x128xf32> -> vector<128x128xf32>
    %c0_7 = arith.constant 0 : index
    %c0_8 = arith.constant 0 : index
    %12 = vector.load %arg7[%c0_7, %c0_8] : memref<128x1xf32, #tpu.memory_space<vmem>>, vector<128x1xf32>
    %13 = arith.cmpi eq, %arg0, %arg1 : i32
    %c0_i32_9 = arith.constant 0 : i32
    %14 = arith.cmpi eq, %arg1, %c0_i32_9 : i32
    %15 = arith.ori %13, %14 : i1
    %16 = arith.extui %15 : i1 to i32
    %cst_10 = arith.constant -1.000000e+30 : f32
    %c0_i32_11 = arith.constant 0 : i32
    %17 = arith.cmpi ne, %16, %c0_i32_11 : i32
    %18:4 = scf.if %17 -> (vector<128x1xf32>, vector<128x1xf32>, vector<128x1xf32>, vector<128x1xf32>) {
      %c128_i32_28 = arith.constant 128 : i32
      %35 = arith.muli %arg0, %c128_i32_28 : i32
      %36 = tpu.iota {dimensions = array<i32: 0>} : vector<128x1xi32>
      %37 = vector.broadcast %35 : i32 to vector<128x1xi32>
      %38 = arith.addi %37, %36 : vector<128x1xi32>
      %39 = tpu.iota {dimensions = array<i32: 1>} : vector<1x128xi32>
      %40 = vector.broadcast %4 : i32 to vector<1x128xi32>
      %41 = arith.addi %40, %39 : vector<1x128xi32>
      %42 = vector.broadcast %38 : vector<128x1xi32> to vector<128x128xi32>
      %43 = vector.broadcast %41 : vector<1x128xi32> to vector<128x128xi32>
      %44 = arith.cmpi ne, %42, %43 : vector<128x128xi32>
      %c16_i32 = arith.constant 16 : i32
      %45 = vector.broadcast %c16_i32 : i32 to vector<1x128xi32>
      %46 = arith.cmpi slt, %41, %45 : vector<1x128xi32>
      %47 = vector.broadcast %46 : vector<1x128xi1> to vector<128x128xi1>
      %48 = arith.andi %44, %47 : vector<128x128xi1>
      %49 = vector.shape_cast %46 : vector<1x128xi1> to vector<1x128xi1>
      %50 = vector.broadcast %49 : vector<1x128xi1> to vector<128x128xi1>
      %51 = vector.broadcast %cst_10 : f32 to vector<128x128xf32>
      %52 = arith.select %50, %11, %51 : vector<128x128xi1>, vector<128x128xf32>
      %cst_29 = arith.constant dense<0xFF800000> : vector<128xf32>
      %53 = vector.multi_reduction <maximumf>, %52, %cst_29 [1] : vector<128x128xf32> to vector<128xf32>
      %54 = vector.shape_cast %53 : vector<128xf32> to vector<128x1xf32>
      %55 = arith.maximumf %12, %54 : vector<128x1xf32>
      %56 = vector.broadcast %55 : vector<128x1xf32> to vector<128x128xf32>
      %57 = arith.subf %11, %56 : vector<128x128xf32>
      %58 = math.exp %57 : vector<128x128xf32>
      %cst_30 = arith.constant 0.000000e+00 : f32
      %59 = vector.broadcast %cst_30 : f32 to vector<128x128xf32>
      %60 = arith.select %48, %58, %59 : vector<128x128xi1>, vector<128x128xf32>
      %61 = vector.broadcast %9 : vector<128x1xi32> to vector<128x128xi32>
      %62 = vector.broadcast %8 : vector<1x128xi32> to vector<128x128xi32>
      %63 = arith.cmpi eq, %61, %62 : vector<128x128xi32>
      %64 = arith.andi %63, %48 : vector<128x128xi1>
      %65 = arith.extui %64 : vector<128x128xi1> to vector<128x128xi32>
      %66 = arith.sitofp %65 : vector<128x128xi32> to vector<128x128xf32>
      %cst_31 = arith.constant dense<0.000000e+00> : vector<128xf32>
      %67 = vector.multi_reduction <add>, %60, %cst_31 [1] : vector<128x128xf32> to vector<128xf32>
      %68 = vector.shape_cast %67 : vector<128xf32> to vector<128x1xf32>
      %69 = arith.mulf %66, %11 : vector<128x128xf32>
      %cst_32 = arith.constant dense<0.000000e+00> : vector<128xf32>
      %70 = vector.multi_reduction <add>, %69, %cst_32 [1] : vector<128x128xf32> to vector<128xf32>
      %71 = vector.shape_cast %70 : vector<128xf32> to vector<128x1xf32>
      %cst_33 = arith.constant dense<0.000000e+00> : vector<128xf32>
      %72 = vector.multi_reduction <add>, %66, %cst_33 [1] : vector<128x128xf32> to vector<128xf32>
      %73 = vector.shape_cast %72 : vector<128xf32> to vector<128x1xf32>
      scf.yield %55, %68, %71, %73 : vector<128x1xf32>, vector<128x1xf32>, vector<128x1xf32>, vector<128x1xf32>
    } else {
      %cst_28 = arith.constant dense<0xFF800000> : vector<128xf32>
      %35 = vector.multi_reduction <maximumf>, %11, %cst_28 [1] : vector<128x128xf32> to vector<128xf32>
      %36 = vector.shape_cast %35 : vector<128xf32> to vector<128x1xf32>
      %37 = arith.maximumf %12, %36 : vector<128x1xf32>
      %38 = vector.broadcast %37 : vector<128x1xf32> to vector<128x128xf32>
      %39 = arith.subf %11, %38 : vector<128x128xf32>
      %40 = math.exp %39 : vector<128x128xf32>
      %41 = vector.broadcast %9 : vector<128x1xi32> to vector<128x128xi32>
      %42 = vector.broadcast %8 : vector<1x128xi32> to vector<128x128xi32>
      %43 = arith.cmpi eq, %41, %42 : vector<128x128xi32>
      %44 = arith.extui %43 : vector<128x128xi1> to vector<128x128xi32>
      %45 = arith.sitofp %44 : vector<128x128xi32> to vector<128x128xf32>
      %cst_29 = arith.constant dense<0.000000e+00> : vector<128xf32>
      %46 = vector.multi_reduction <add>, %40, %cst_29 [1] : vector<128x128xf32> to vector<128xf32>
      %47 = vector.shape_cast %46 : vector<128xf32> to vector<128x1xf32>
      %48 = arith.mulf %45, %11 : vector<128x128xf32>
      %cst_30 = arith.constant dense<0.000000e+00> : vector<128xf32>
      %49 = vector.multi_reduction <add>, %48, %cst_30 [1] : vector<128x128xf32> to vector<128xf32>
      %50 = vector.shape_cast %49 : vector<128xf32> to vector<128x1xf32>
      %cst_31 = arith.constant dense<0.000000e+00> : vector<128xf32>
      %51 = vector.multi_reduction <add>, %45, %cst_31 [1] : vector<128x128xf32> to vector<128xf32>
      %52 = vector.shape_cast %51 : vector<128xf32> to vector<128x1xf32>
      scf.yield %37, %47, %50, %52 : vector<128x1xf32>, vector<128x1xf32>, vector<128x1xf32>, vector<128x1xf32>
    }
    %19 = arith.subf %12, %18#0 : vector<128x1xf32>
    %20 = math.exp %19 : vector<128x1xf32>
    %c0_12 = arith.constant 0 : index
    %c0_13 = arith.constant 0 : index
    %21 = vector.load %arg8[%c0_12, %c0_13] : memref<128x1xf32, #tpu.memory_space<vmem>>, vector<128x1xf32>
    %22 = arith.mulf %20, %21 : vector<128x1xf32>
    %23 = arith.addf %22, %18#1 : vector<128x1xf32>
    %c0_14 = arith.constant 0 : index
    %c0_15 = arith.constant 0 : index
    %24 = vector.load %arg8[%c0_14, %c0_15] : memref<128x1xf32, #tpu.memory_space<vmem>>, vector<128x1xf32>
    tpu.vector_store %arg8[%c0_14, %c0_15], %23 {strides = array<i32>} : memref<128x1xf32, #tpu.memory_space<vmem>>, vector<128x1xf32>,
    %c0_16 = arith.constant 0 : index
    %c0_17 = arith.constant 0 : index
    %25 = vector.load %arg9[%c0_16, %c0_17] : memref<128x1xf32, #tpu.memory_space<vmem>>, vector<128x1xf32>
    %26 = arith.addf %25, %18#2 : vector<128x1xf32>
    %c0_18 = arith.constant 0 : index
    %c0_19 = arith.constant 0 : index
    %27 = vector.load %arg9[%c0_18, %c0_19] : memref<128x1xf32, #tpu.memory_space<vmem>>, vector<128x1xf32>
    tpu.vector_store %arg9[%c0_18, %c0_19], %26 {strides = array<i32>} : memref<128x1xf32, #tpu.memory_space<vmem>>, vector<128x1xf32>,
    %c0_20 = arith.constant 0 : index
    %c0_21 = arith.constant 0 : index
    %28 = vector.load %arg10[%c0_20, %c0_21] : memref<128x1xf32, #tpu.memory_space<vmem>>, vector<128x1xf32>
    %29 = arith.addf %28, %18#3 : vector<128x1xf32>
    %c0_22 = arith.constant 0 : index
    %c0_23 = arith.constant 0 : index
    %30 = vector.load %arg10[%c0_22, %c0_23] : memref<128x1xf32, #tpu.memory_space<vmem>>, vector<128x1xf32>
    tpu.vector_store %arg10[%c0_22, %c0_23], %29 {strides = array<i32>} : memref<128x1xf32, #tpu.memory_space<vmem>>, vector<128x1xf32>,
    %c0_24 = arith.constant 0 : index
    %c0_25 = arith.constant 0 : index
    %31 = vector.load %arg7[%c0_24, %c0_25] : memref<128x1xf32, #tpu.memory_space<vmem>>, vector<128x1xf32>
    tpu.vector_store %arg7[%c0_24, %c0_25], %18#0 {strides = array<i32>} : memref<128x1xf32, #tpu.memory_space<vmem>>, vector<128x1xf32>,
    %c0_i32_26 = arith.constant 0 : i32
    %32 = arith.cmpi eq, %arg1, %c0_i32_26 : i32
    %33 = arith.extui %32 : i1 to i32
    %c0_i32_27 = arith.constant 0 : i32
    %34 = arith.cmpi ne, %33, %c0_i32_27 : i32
    scf.if %34 {
      %c0_28 = arith.constant 0 : index
      %c0_29 = arith.constant 0 : index
      %35 = vector.load %arg7[%c0_28, %c0_29] : memref<128x1xf32, #tpu.memory_space<vmem>>, vector<128x1xf32>
      %c0_30 = arith.constant 0 : index
      %c0_31 = arith.constant 0 : index
      %36 = vector.load %arg8[%c0_30, %c0_31] : memref<128x1xf32, #tpu.memory_space<vmem>>, vector<128x1xf32>
      %37 = math.log %36 : vector<128x1xf32>
      %38 = arith.addf %35, %37 : vector<128x1xf32>
      %c0_32 = arith.constant 0 : index
      %c0_33 = arith.constant 0 : index
      %39 = vector.load %arg10[%c0_32, %c0_33] : memref<128x1xf32, #tpu.memory_space<vmem>>, vector<128x1xf32>
      %cst_34 = arith.constant 1.000000e+00 : f32
      %40 = vector.broadcast %cst_34 : f32 to vector<128x1xf32>
      %41 = arith.maximumf %39, %40 : vector<128x1xf32>
      %c0_35 = arith.constant 0 : index
      %c0_36 = arith.constant 0 : index
      %42 = vector.load %arg9[%c0_35, %c0_36] : memref<128x1xf32, #tpu.memory_space<vmem>>, vector<128x1xf32>
      %43 = arith.mulf %39, %38 : vector<128x1xf32>
      %44 = arith.subf %42, %43 : vector<128x1xf32>
      %45 = arith.divf %44, %41 : vector<128x1xf32>
      %cst_37 = arith.constant -1.000000e+00 : f32
      %46 = vector.broadcast %cst_37 : f32 to vector<128x1xf32>
      %47 = arith.mulf %46, %45 : vector<128x1xf32>
      %c0_38 = arith.constant 0 : index
      %c0_39 = arith.constant 0 : index
      %48 = vector.load %arg6[%c0_38, %c0_39] : memref<128x1xf32, #tpu.memory_space<vmem>>, vector<128x1xf32>
      tpu.vector_store %arg6[%c0_38, %c0_39], %47 {strides = array<i32>} : memref<128x1xf32, #tpu.memory_space<vmem>>, vector<128x1xf32>,
    } else {
    }
    return
  }
  func.func @transform_0(%arg0: i32, %arg1: i32) -> (i32, i32) {
    %c0_i32 = arith.constant 0 : i32
    %c0_i32_0 = arith.constant 0 : i32
    return %arg0, %c0_i32 : i32, i32
  }
  func.func @transform_1(%arg0: i32, %arg1: i32) -> (i32, i32) {
    %c0_i32 = arith.constant 0 : i32
    %c0_i32_0 = arith.constant 0 : i32
    %c0_i32_1 = arith.constant 0 : i32
    return %c0_i32, %c0_i32_0 : i32, i32
  }
  func.func @transform_2(%arg0: i32, %arg1: i32) -> (i32, i32) {
    %c0_i32 = arith.constant 0 : i32
    %c0_i32_0 = arith.constant 0 : i32
    return %arg0, %c0_i32 : i32, i32
  }
  func.func @transform_3(%arg0: i32, %arg1: i32) -> (i32, i32) {
    %c0_i32 = arith.constant 0 : i32
    %c0_i32_0 = arith.constant 0 : i32
    %c0_i32_1 = arith.constant 0 : i32
    return %c0_i32, %c0_i32_0 : i32, i32
  }
  func.func @transform_4(%arg0: i32, %arg1: i32) -> (i32, i32) {
    %c0_i32 = arith.constant 0 : i32
    %c0_i32_0 = arith.constant 0 : i32
    return %arg0, %c0_i32 : i32, i32
  }
}

</mosaic_0001>

<bundles_post_ra>
// kernel: tpu_custom_call.1
= control target key start
LH: loop header
LB: loop body
LE: loop exit
PB: predicated region body
PF: predicated region fallthrough
CT: control target
= control target key end

     0   :  { %9 = vsyncpa [#allocation7], 0  ;;  %s2136_s15 = smov [#allocation6]   ;;  %s3222_s0 = inlined_call_operand.vmem [shape: s32[128,1], index: 0, kind: input, shape index: {}]   ;;  %s3223_s1 = inlined_call_operand.vmem [shape: s32[1,128], index: 1, kind: input, shape index: {}]   ;;  %s3224_s2 = inlined_call_operand.vmem [shape: f32[128,128], index: 2, kind: input, shape index: {}]   ;;  %s3225_s3 = inlined_call_operand.hbm [shape: f32[128,128], index: 3, kind: input, shape index: {}]   ;;  %s3226_s4 = inlined_call_operand.vmem [shape: f32[128,1], index: 4, kind: output, shape index: {}]  }
   0x1   :  { %s21_s16 = sshll.u32 %s2136_s15, 4  ;;  %s2112_s19 = scalar_lea.hbm %s3225_s3, 2048  ;;  %s22_s16 = int_to_ptr.vmem [resolvable:$true] %s21_s16 }
   0x2   :  { %p2113_p0 = scmp.ne.s32.totalorder %s3225_s3, %s2112_s19  ;;  %p2116_p1 = scmp.lt.u32.totalorder %s2112_s19, %s3225_s3 }
   0x4   :  { %p2118_p2 = pnand %p2116_p1, %p2113_p0 }
   0x6   :  { %2121 = shalt.err (!%p2118_p2)
}
   0x7   :  { %s2122_s24 = scalar_lea.vmem %s22_s16, 2048  ;;  %p2127_p4 = scmp.lt.s32.totalorder %s22_s16, %s22_s16 }
   0x8   :  { %p2123_p3 = scmp.ne.s32.totalorder %s22_s16, %s2122_s24  ;;  %p2128_p5 = scmp.lt.s32.totalorder %s2122_s24, %s2122_s24 }
   0xa   :  { %p2129_p6 = por %p2128_p5, %p2127_p4 }
   0xc   :  { %p2130_p7 = pnand %p2129_p6, %p2123_p3 }
   0xe   :  { %2133 = shalt.err (!%p2130_p7)
}
   0xf   :  { %s2137_s25 = smov 128   ;;  %s2138_s26 = smov 8  }
  0x10   :  { %27 = dma.hbm_to_vmem [thread:$0]  %s3225_s3, 2048, %s22_s16, [#allocation7], %s2137_s25, %s2137_s25, %s2138_s26  }
  0x11   :  { %2134 = dma.done.wait [#allocation7], 2048  }
  0x12   :  { %2135 = vsyncadd [#allocation7], 4294965248  ;;  %v2139_v0 = vmov 0   ;;  %v102_v1 = vld [vmem:[#allocation6] sm:$0xff]  ;;  %v103_v2 = vld [vmem:[#allocation6 + $0x8] sm:$0xff]  ;;  %v321_v56 = vlaneseq }
  0x13   :  { %1982 = vset.pattern.permute.xlu1 %v2139_v0  ;;  %1983 = vset.pattern.permute.xlu0 %v2139_v0  ;;  %v104_v3 = vld [vmem:[#allocation6 + $0x10] sm:$0xff]  ;;  %v1928_v4 = vpack.c.bf16 %v103_v2, %v102_v1  ;;  %v105_v5 = vld [vmem:[#allocation6 + $0x18] sm:$0xff]  ;;  %v138_v7 = vld [vmem:[%s3224_s2] sm:$0xff] }
  0x14   :  { %v1932_v6 = vpack.c.bf16 %v105_v5, %v104_v3  ;;  %v146_v8 = vld [vmem:[%s3224_s2 + $0x40] sm:$0xff]  ;;  %v107_v10 = vld [vmem:[#allocation6 + $0x28] sm:$0xff]  ;;  %1904 = vmatprep.mubr.f32.mxu0 %v138_v7  ;;  %v124_v14 = vld [vmem:[%s3222_s0 + $0x10] sm:$0xff]  ;;  %v2272_v57 = vshrl.u32 %v321_v56, 7  ;;  %v2274_v58 = vand.u32 127, %v321_v56 }
  0x15   :  { %1929 = vmatprep.subr.bf16.mxu0 %v1928_v4  ;;  %1960 = vmatprep.subr.bf16.mxu1 %v1928_v4  ;;  %v106_v9 = vld [vmem:[#allocation6 + $0x20] sm:$0xff]  ;;  %v123_v13 = vld [vmem:[%s3222_s0 + $0x8] sm:$0xff]  ;;  %v108_v15 = vld [vmem:[#allocation6 + $0x30] sm:$0xff] }
  0x16   :  { %1931 = vmatpush3.bf16.xpose.msra.mxu0 %v1928_v4  ;;  %1968 = vmatpush3.bf16.xpose.msra.mxu1 %v1928_v4  ;;  %v1936_v11 = vpack.c.bf16 %v107_v10, %v106_v9  ;;  %v122_v12 = vld [vmem:[%s3222_s0] sm:$0xff]  ;;  %v109_v16 = vld [vmem:[#allocation6 + $0x38] sm:$0xff]  ;;  %v127_v20 = vld [vmem:[%s3222_s0 + $0x28] sm:$0xff]  ;;  %v323_v59 = vadd.s32 8, %v2272_v57  ;;  %vm359_vm0 = vcmp.ne.s32.totalorder %v2272_v57, %v2274_v58  ;;  %vm375_vm1 = vcmp.lt.s32.totalorder %v2274_v58, 16 }
  0x17   :  { %1933 = vmatprep.subr.bf16.mxu0 %v1932_v6  ;;  %1961 = vmatprep.subr.bf16.mxu1 %v1932_v6  ;;  %v125_v17 = vld [vmem:[%s3222_s0 + $0x18] sm:$0xff]  ;;  %v126_v18 = vld [vmem:[%s3222_s0 + $0x20] sm:$0xff]  ;;  %v1940_v19 = vpack.c.bf16 %v109_v16, %v108_v15  ;;  %v128_v21 = vld [vmem:[%s3222_s0 + $0x30] sm:$0xff]  ;;  %v324_v60 = vadd.s32 16, %v2272_v57  ;;  %v325_v61 = vadd.s32 24, %v2272_v57  ;;  %v326_v1 = vadd.s32 32, %v2272_v57 }
  0x18   :  { %1916 = vmatprep.mubr.f32.mxu1 %v146_v8  ;;  %603 = vperm.xlu1 %1982, %v122_v12   ;;  %v110_v22 = vld [vmem:[#allocation6 + $0x40] sm:$0xff]  ;;  %v111_v23 = vld [vmem:[#allocation6 + $0x48] sm:$0xff]  ;;  %v129_v24 = vld [vmem:[%s3222_s0 + $0x38] sm:$0xff]  ;;  %vm360_vm2 = vcmp.ne.s32.totalorder %v323_v59, %v2274_v58  ;;  %v3227_v4 = vmov 0.0   ;;  %v3269_v12 = vmov 0 }
  0x19   :  { %606 = vperm.xlu0 %1983, %v123_v13   ;;  %v130_v25 = vld [vmem:[%s3222_s0 + $0x40] sm:$0xff]  ;;  %v1944_v26 = vpack.c.bf16 %v111_v23, %v110_v22  ;;  %v131_v27 = vld [vmem:[%s3222_s0 + $0x48] sm:$0xff]  ;;  %v132_v28 = vld [vmem:[%s3222_s0 + $0x50] sm:$0xff]  ;;  %vm361_vm4 = vcmp.ne.s32.totalorder %v324_v60, %v2274_v58  ;;  %vm362_vm7 = vcmp.ne.s32.totalorder %v325_v61, %v2274_v58  ;;  %vm363_vm11 = vcmp.ne.s32.totalorder %v326_v1, %v2274_v58 }
  0x1a   :  { %v112_v29 = vld [vmem:[#allocation6 + $0x50] sm:$0xff]  ;;  %v113_v30 = vld [vmem:[#allocation6 + $0x58] sm:$0xff]  ;;  %v134_v32 = vld [vmem:[%s3222_s0 + $0x60] sm:$0xff]  ;;  %v2141_v16 = vmov -1e+30   ;;  %v327_v23 = vadd.s32 40, %v2272_v57 }
  0x1b   :  { %v133_v31 = vld [vmem:[%s3222_s0 + $0x58] sm:$0xff]  ;;  %v1948_v33 = vpack.c.bf16 %v113_v30, %v112_v29  ;;  %v135_v34 = vld [vmem:[%s3222_s0 + $0x68] sm:$0xff]  ;;  %v136_v35 = vld [vmem:[%s3222_s0 + $0x70] sm:$0xff] }
  0x1c   :  { %609 = vperm.xlu1 %1982, %v124_v14   ;;  %v114_v36 = vld [vmem:[#allocation6 + $0x60] sm:$0xff]  ;;  %v115_v37 = vld [vmem:[#allocation6 + $0x68] sm:$0xff]  ;;  %v116_v39 = vld [vmem:[#allocation6 + $0x70] sm:$0xff] }
  0x1d   :  { %612 = vperm.xlu0 %1983, %v125_v17   ;;  %v1952_v38 = vpack.c.bf16 %v115_v37, %v114_v36  ;;  %v117_v40 = vld [vmem:[#allocation6 + $0x78] sm:$0xff]  ;;  %v139_v42 = vld [vmem:[%s3224_s2 + $0x8] sm:$0xff]  ;;  %v140_v44 = vld [vmem:[%s3224_s2 + $0x10] sm:$0xff] }
  0x1e   :  { %1935 = vmatpush3.bf16.xpose.msra.mxu0 %v1932_v6  ;;  %1969 = vmatpush3.bf16.xpose.msra.mxu1 %v1932_v6  ;;  %v1956_v41 = vpack.c.bf16 %v117_v40, %v116_v39  ;;  %v147_v43 = vld [vmem:[%s3224_s2 + $0x48] sm:$0xff]  ;;  %v148_v45 = vld [vmem:[%s3224_s2 + $0x50] sm:$0xff]  ;;  %v141_v46 = vld [vmem:[%s3224_s2 + $0x18] sm:$0xff] }
  0x1f   :  { %1937 = vmatprep.subr.bf16.mxu0 %v1936_v11  ;;  %1962 = vmatprep.subr.bf16.mxu1 %v1936_v11  ;;  %v149_v47 = vld [vmem:[%s3224_s2 + $0x58] sm:$0xff]  ;;  %v142_v48 = vld [vmem:[%s3224_s2 + $0x20] sm:$0xff]  ;;  %v143_v50 = vld [vmem:[%s3224_s2 + $0x28] sm:$0xff] }
  0x20   :  { %615 = vperm.xlu1 %1982, %v126_v18   ;;  %v150_v49 = vld [vmem:[%s3224_s2 + $0x60] sm:$0xff]  ;;  %v151_v51 = vld [vmem:[%s3224_s2 + $0x68] sm:$0xff]  ;;  %v144_v52 = vld [vmem:[%s3224_s2 + $0x30] sm:$0xff] }
  0x21   :  { %618 = vperm.xlu0 %1983, %v127_v20   ;;  %v152_v53 = vld [vmem:[%s3224_s2 + $0x70] sm:$0xff]  ;;  %v145_v54 = vld [vmem:[%s3224_s2 + $0x38] sm:$0xff]  ;;  %v2285_v62 = vld [vmem:[%s3223_s1] ss:$0 sm:$0xff] }
  0x22   :  { %v153_v55 = vld [vmem:[%s3224_s2 + $0x78] sm:$0xff]  ;;  %vm2290_vm3 = vmand %vm359_vm0, %vm375_vm1 }
  0x23   :  { %vm2299_vm6 = vmand %vm360_vm2, %vm375_vm1 }
  0x24   :  { %621 = vperm.xlu1 %1982, %v128_v21   ;;  %vm2311_vm9 = vmand %vm361_vm4, %vm375_vm1 }
  0x25   :  { %624 = vperm.xlu0 %1983, %v129_v24   ;;  %vm2320_vm12 = vmand %vm362_vm7, %vm375_vm1 }
  0x26   :  { %1939 = vmatpush3.bf16.xpose.msra.mxu0 %v1936_v11  ;;  %1970 = vmatpush3.bf16.xpose.msra.mxu1 %v1936_v11  ;;  %vm2337_vm0 = vmand %vm363_vm11, %vm375_vm1 }
  0x27   :  { %1941 = vmatprep.subr.bf16.mxu0 %v1940_v19  ;;  %1963 = vmatprep.subr.bf16.mxu1 %v1940_v19  ;;  %v3270_v12 = vsel %vm2337_vm0, 4294967295, %v3269_v12 }
  0x28   :  { %627 = vperm.xlu1 %1982, %v130_v25  }
  0x29   :  { %630 = vperm.xlu0 %1983, %v131_v27  }
  0x2c   :  { %633 = vperm.xlu1 %1982, %v132_v28  }
  0x2d   :  { %636 = vperm.xlu0 %1983, %v133_v31  }
  0x2e   :  { %1943 = vmatpush3.bf16.xpose.msra.mxu0 %v1940_v19  ;;  %1971 = vmatpush3.bf16.xpose.msra.mxu1 %v1940_v19 }
  0x2f   :  { %1945 = vmatprep.subr.bf16.mxu0 %v1944_v26  ;;  %1964 = vmatprep.subr.bf16.mxu1 %v1944_v26 }
  0x30   :  { %639 = vperm.xlu1 %1982, %v134_v32  }
  0x31   :  { %642 = vperm.xlu0 %1983, %v135_v34  }
  0x34   :  { %645 = vperm.xlu1 %1982, %v136_v35  }
  0x36   :  { %1947 = vmatpush3.bf16.xpose.msra.mxu0 %v1944_v26  ;;  %1972 = vmatpush3.bf16.xpose.msra.mxu1 %v1944_v26 }
  0x37   :  { %1949 = vmatprep.subr.bf16.mxu0 %v1948_v33  ;;  %1965 = vmatprep.subr.bf16.mxu1 %v1948_v33 }
  0x3e   :  { %1951 = vmatpush3.bf16.xpose.msra.mxu0 %v1948_v33  ;;  %1973 = vmatpush3.bf16.xpose.msra.mxu1 %v1948_v33 }
  0x3f   :  { %1953 = vmatprep.subr.bf16.mxu0 %v1952_v38  ;;  %1966 = vmatprep.subr.bf16.mxu1 %v1952_v38 }
  0x46   :  { %1955 = vmatpush3.bf16.xpose.msra.mxu0 %v1952_v38  ;;  %1974 = vmatpush3.bf16.xpose.msra.mxu1 %v1952_v38 }
  0x47   :  { %1957 = vmatprep.subr.bf16.mxu0 %v1956_v41  ;;  %1967 = vmatprep.subr.bf16.mxu1 %v1956_v41 }
  0x4e   :  { %1959 = vmatpush3.bf16.xpose.msra.mxu0 %v1956_v41  ;;  %1975 = vmatpush3.bf16.xpose.msra.mxu1 %v1956_v41 }
  0x55   :  { %1905 = vmatmul.mubr.f32.vlgmr.msra.gmra.mrb[0].mxu0 %v139_v42  ;;  %1917 = vmatmul.mubr.f32.vlgmr.msra.gmra.mrb[0].mxu1 %v147_v43 }
  0x56   :  { %1907 = vmatprep.mubr.f32.mxu0 %v140_v44  ;;  %1919 = vmatprep.mubr.f32.mxu1 %v148_v45 }
  0x59   :  { %1908 = vmatmul.mubr.f32.gmra.mrb[2].mxu0 %v141_v46  ;;  %1920 = vmatmul.mubr.f32.gmra.mrb[2].mxu1 %v149_v47 }
  0x5a   :  { %1910 = vmatprep.mubr.f32.mxu0 %v142_v48  ;;  %1922 = vmatprep.mubr.f32.mxu1 %v150_v49 }
  0x5d   :  { %1911 = vmatmul.mubr.f32.gmra.mrb[4].mxu0 %v143_v50  ;;  %1923 = vmatmul.mubr.f32.gmra.mrb[4].mxu1 %v151_v51 }
  0x5e   :  { %1913 = vmatprep.mubr.f32.mxu0 %v144_v52  ;;  %1925 = vmatprep.mubr.f32.mxu1 %v152_v53 }
  0x61   :  { %1914 = vmatmul.mubr.f32.gmra.mrb[6].mxu0 %v145_v54  ;;  %1926 = vmatmul.mubr.f32.gmra.mrb[6].mxu1 %v153_v55 }
  0x97   :  { %v604_v0 = vpop.permute.xlu1 %603 }
  0x98   :  { %vm654_vm5 = vcmp.eq.s32.totalorder %v604_v0, %v2285_v62  ;;  %v607_v3 = vpop.permute.xlu0 %606 }
  0x99   :  { %vm670_vm8 = vmand %vm654_vm5, %vm2290_vm3  ;;  %vm655_vm10 = vcmp.eq.s32.totalorder %v607_v3, %v2285_v62 }
  0x9a   :  { %v2307_v5 = vsel %vm670_vm8, 1.0, %v3227_v4  ;;  %vm671_vm14 = vmand %vm655_vm10, %vm2299_vm6  ;;  %vm3246_vm8 = vcmask 7168   ;;  %vm364_vm10 = vcmp.ne.s32.totalorder %v327_v23, %v2274_v58 }
  0x9b   :  { %v610_v7 = vpop.permute.xlu1 %609  ;;  %798 = vadd.xlane.f32.xlu0 %v2307_v5  ;;  %v2330_v9 = vsel %vm671_vm14, 1.0, %v3227_v4  ;;  %84 = vst.msk [vmem:[#allocation5] sm:$0xff] %vm3246_vm8, %v3227_v4  ;;  %52 = vst.msk [vmem:[#allocation3] sm:$0xff] %vm3246_vm8, %v3227_v4 }
  0x9c   :  { %vm656_vm13 = vcmp.eq.s32.totalorder %v610_v7, %v2285_v62  ;;  %v613_v10 = vpop.permute.xlu0 %612  ;;  %800 = vadd.xlane.f32.xlu1 %v2330_v9  ;;  %53 = vst.msk [vmem:[#allocation3 + $0x8] sm:$0xff] %vm3246_vm8, %v3227_v4  ;;  %54 = vst.msk [vmem:[#allocation3 + $0x10] sm:$0xff] %vm3246_vm8, %v3227_v4 }
  0x9d   :  { %vm672_vm15 = vmand %vm656_vm13, %vm2311_vm9  ;;  %vm657_vm2 = vcmp.eq.s32.totalorder %v613_v10, %v2285_v62  ;;  %55 = vst.msk [vmem:[#allocation3 + $0x18] sm:$0xff] %vm3246_vm8, %v3227_v4 }
  0x9e   :  { %v2333_v11 = vsel %vm672_vm15, 1.0, %v3227_v4  ;;  %vm673_vm5 = vmand %vm657_vm2, %vm2320_vm12  ;;  %56 = vst.msk [vmem:[#allocation3 + $0x20] sm:$0xff] %vm3246_vm8, %v3227_v4 }
  0x9f   :  { %v616_v13 = vpop.permute.xlu1 %615  ;;  %802 = vadd.xlane.f32.xlu0 %v2333_v11  ;;  %v2350_v14 = vsel %vm673_vm5, 1.0, %v3227_v4  ;;  %57 = vst.msk [vmem:[#allocation3 + $0x28] sm:$0xff] %vm3246_vm8, %v3227_v4  ;;  %58 = vst.msk [vmem:[#allocation3 + $0x30] sm:$0xff] %vm3246_vm8, %v3227_v4 }
  0xa0   :  { %vm658_vm4 = vcmp.eq.s32.totalorder %v616_v13, %v2285_v62  ;;  %804 = vadd.xlane.f32.xlu1 %v2350_v14  ;;  %59 = vst.msk [vmem:[#allocation3 + $0x38] sm:$0xff] %vm3246_vm8, %v3227_v4  ;;  %60 = vst.msk [vmem:[#allocation3 + $0x40] sm:$0xff] %vm3246_vm8, %v3227_v4  ;;  %v619_v17 = vpop.permute.xlu0 %618 }
  0xa1   :  { %vm674_vm7 = vmand %vm658_vm4, %vm2337_vm0  ;;  %61 = vst.msk [vmem:[#allocation3 + $0x48] sm:$0xff] %vm3246_vm8, %v3227_v4  ;;  %vm659_vm11 = vcmp.eq.s32.totalorder %v619_v17, %v2285_v62 }
  0xa2   :  { %v2353_v15 = vsel %vm674_vm7, 1.0, %v3227_v4  ;;  %62 = vst.msk [vmem:[#allocation3 + $0x50] sm:$0xff] %vm3246_vm8, %v3227_v4  ;;  %63 = vst.msk [vmem:[#allocation3 + $0x58] sm:$0xff] %vm3246_vm8, %v3227_v4  ;;  %v1510_v36 = vld [vmem:[#allocation5] sm:$0xff] }
  0xa3   :  { %806 = vadd.xlane.f32.xlu0 %v2353_v15  ;;  %64 = vst.msk [vmem:[#allocation3 + $0x60] sm:$0xff] %vm3246_vm8, %v3227_v4  ;;  %65 = vst.msk [vmem:[#allocation3 + $0x68] sm:$0xff] %vm3246_vm8, %v3227_v4  ;;  %v2469_v18 = vpop.permute.xlu1 %621 }
  0xa4   :  { %66 = vst.msk [vmem:[#allocation3 + $0x70] sm:$0xff] %vm3246_vm8, %v3227_v4  ;;  %67 = vst.msk [vmem:[#allocation3 + $0x78] sm:$0xff] %vm3246_vm8, %v3227_v4  ;;  %v2471_v19 = vpop.permute.xlu0 %624 }
  0xa5   :  { %68 = vst.msk [vmem:[#allocation4] sm:$0xff] %vm3246_vm8, %v3227_v4  ;;  %69 = vst.msk [vmem:[#allocation4 + $0x8] sm:$0xff] %vm3246_vm8, %v3227_v4 }
  0xa6   :  { %70 = vst.msk [vmem:[#allocation4 + $0x10] sm:$0xff] %vm3246_vm8, %v3227_v4  ;;  %71 = vst.msk [vmem:[#allocation4 + $0x18] sm:$0xff] %vm3246_vm8, %v3227_v4 }
  0xa7   :  { %72 = vst.msk [vmem:[#allocation4 + $0x20] sm:$0xff] %vm3246_vm8, %v3227_v4  ;;  %73 = vst.msk [vmem:[#allocation4 + $0x28] sm:$0xff] %vm3246_vm8, %v3227_v4  ;;  %v2473_v20 = vpop.permute.xlu1 %627 }
  0xa8   :  { %74 = vst.msk [vmem:[#allocation4 + $0x30] sm:$0xff] %vm3246_vm8, %v3227_v4  ;;  %75 = vst.msk [vmem:[#allocation4 + $0x38] sm:$0xff] %vm3246_vm8, %v3227_v4  ;;  %v2475_v21 = vpop.permute.xlu0 %630 }
  0xa9   :  { %76 = vst.msk [vmem:[#allocation4 + $0x40] sm:$0xff] %vm3246_vm8, %v3227_v4  ;;  %77 = vst.msk [vmem:[#allocation4 + $0x48] sm:$0xff] %vm3246_vm8, %v3227_v4 }
  0xaa   :  { %78 = vst.msk [vmem:[#allocation4 + $0x50] sm:$0xff] %vm3246_vm8, %v3227_v4  ;;  %79 = vst.msk [vmem:[#allocation4 + $0x58] sm:$0xff] %vm3246_vm8, %v3227_v4 }
  0xab   :  { %80 = vst.msk [vmem:[#allocation4 + $0x60] sm:$0xff] %vm3246_vm8, %v3227_v4  ;;  %81 = vst.msk [vmem:[#allocation4 + $0x68] sm:$0xff] %vm3246_vm8, %v3227_v4  ;;  %v2477_v22 = vpop.permute.xlu1 %633 }
  0xac   :  { %82 = vst.msk [vmem:[#allocation4 + $0x70] sm:$0xff] %vm3246_vm8, %v3227_v4  ;;  %83 = vst.msk [vmem:[#allocation4 + $0x78] sm:$0xff] %vm3246_vm8, %v3227_v4  ;;  %v2480_v24 = vpop.permute.xlu0 %636 }
  0xad   :  { %85 = vst.msk [vmem:[#allocation5 + $0x8] sm:$0xff] %vm3246_vm8, %v3227_v4  ;;  %86 = vst.msk [vmem:[#allocation5 + $0x10] sm:$0xff] %vm3246_vm8, %v3227_v4 }
  0xae   :  { %87 = vst.msk [vmem:[#allocation5 + $0x18] sm:$0xff] %vm3246_vm8, %v3227_v4  ;;  %88 = vst.msk [vmem:[#allocation5 + $0x20] sm:$0xff] %vm3246_vm8, %v3227_v4 }
  0xaf   :  { %89 = vst.msk [vmem:[#allocation5 + $0x28] sm:$0xff] %vm3246_vm8, %v3227_v4  ;;  %90 = vst.msk [vmem:[#allocation5 + $0x30] sm:$0xff] %vm3246_vm8, %v3227_v4  ;;  %v2482_v25 = vpop.permute.xlu1 %639 }
  0xb0   :  { %91 = vst.msk [vmem:[#allocation5 + $0x38] sm:$0xff] %vm3246_vm8, %v3227_v4  ;;  %92 = vst.msk [vmem:[#allocation5 + $0x40] sm:$0xff] %vm3246_vm8, %v3227_v4  ;;  %v2500_v32 = vpop.permute.xlu0 %642 }
  0xb1   :  { %93 = vst.msk [vmem:[#allocation5 + $0x48] sm:$0xff] %vm3246_vm8, %v3227_v4  ;;  %94 = vst.msk [vmem:[#allocation5 + $0x50] sm:$0xff] %vm3246_vm8, %v3227_v4 }
  0xb2   :  { %95 = vst.msk [vmem:[#allocation5 + $0x58] sm:$0xff] %vm3246_vm8, %v3227_v4  ;;  %96 = vst.msk [vmem:[#allocation5 + $0x60] sm:$0xff] %vm3246_vm8, %v3227_v4 }
  0xb3   :  { %97 = vst.msk [vmem:[#allocation5 + $0x68] sm:$0xff] %vm3246_vm8, %v3227_v4  ;;  %98 = vst.msk [vmem:[#allocation5 + $0x70] sm:$0xff] %vm3246_vm8, %v3227_v4  ;;  %v2524_v41 = vpop.permute.xlu1 %645 }
  0xb4   :  { %99 = vst.msk [vmem:[#allocation5 + $0x78] sm:$0xff] %vm3246_vm8, %v3227_v4  ;;  %45 = vst.msk [vmem:[#allocation2 + $0x48] sm:$0xff] %vm3246_vm8, %v2141_v16  ;;  %v1512_v47 = vld [vmem:[#allocation5 + $0x10] sm:$0xff]  ;;  %v1511_v48 = vld [vmem:[#allocation5 + $0x8] sm:$0xff] }
  0xb5   :  { %36 = vst.msk [vmem:[#allocation2] sm:$0xff] %vm3246_vm8, %v2141_v16  ;;  %37 = vst.msk [vmem:[#allocation2 + $0x8] sm:$0xff] %vm3246_vm8, %v2141_v16  ;;  %v1514_v1 = vld [vmem:[#allocation5 + $0x20] sm:$0xff]  ;;  %v1513_v3 = vld [vmem:[#allocation5 + $0x18] sm:$0xff] }
  0xb6   :  { %38 = vst.msk [vmem:[#allocation2 + $0x10] sm:$0xff] %vm3246_vm8, %v2141_v16  ;;  %39 = vst.msk [vmem:[#allocation2 + $0x18] sm:$0xff] %vm3246_vm8, %v2141_v16 }
  0xb7   :  { %40 = vst.msk [vmem:[#allocation2 + $0x20] sm:$0xff] %vm3246_vm8, %v2141_v16  ;;  %41 = vst.msk [vmem:[#allocation2 + $0x28] sm:$0xff] %vm3246_vm8, %v2141_v16 }
  0xb8   :  { %42 = vst.msk [vmem:[#allocation2 + $0x30] sm:$0xff] %vm3246_vm8, %v2141_v16  ;;  %43 = vst.msk [vmem:[#allocation2 + $0x38] sm:$0xff] %vm3246_vm8, %v2141_v16 }
  0xb9   :  { %44 = vst.msk [vmem:[#allocation2 + $0x40] sm:$0xff] %vm3246_vm8, %v2141_v16  ;;  %46 = vst.msk [vmem:[#allocation2 + $0x50] sm:$0xff] %vm3246_vm8, %v2141_v16 }
  0xba   :  { %47 = vst.msk [vmem:[#allocation2 + $0x58] sm:$0xff] %vm3246_vm8, %v2141_v16  ;;  %48 = vst.msk [vmem:[#allocation2 + $0x60] sm:$0xff] %vm3246_vm8, %v2141_v16 }
  0xbb   :  { %49 = vst.msk [vmem:[#allocation2 + $0x68] sm:$0xff] %vm3246_vm8, %v2141_v16  ;;  %50 = vst.msk [vmem:[#allocation2 + $0x70] sm:$0xff] %vm3246_vm8, %v2141_v16 }
  0xbc   :  { %51 = vst.msk [vmem:[#allocation2 + $0x78] sm:$0xff] %vm3246_vm8, %v2141_v16  ;;  %vm2504_vm13 = vmand %vm364_vm10, %vm375_vm1  ;;  %vm660_vm10 = vcmp.eq.s32.totalorder %v2469_v18, %v2285_v62 }
  0xbd   :  { %vm675_vm14 = vmand %vm659_vm11, %vm2504_vm13 }
  0xbe   :  { %v2534_v49 = vsel %vm675_vm14, 1.0, %v3227_v4 }
 0x128   :  { %v2485_v26 = vpop.f32.mrb[0].mxu0  ;;  %v2487_v27 = vpop.f32.mrb[0].mxu1 }
 0x129   :  { %v2489_v28 = vpop.f32.mrb[1].mxu0  ;;  %v2491_v29 = vpop.f32.mrb[1].mxu1  ;;  %v403_v30 = vsel %vm375_vm1, %v2487_v27, -1e+30  ;;  %v395_v31 = vsel %vm375_vm1, %v2485_v26, -1e+30 }
 0x12a   :  { %428 = vmax.xlane.f32.xlu1 %v403_v30  ;;  %412 = vmax.xlane.f32.xlu0 %v395_v31  ;;  %v394_v39 = vsel %vm375_vm1, %v2489_v28, -1e+30  ;;  %v799_v42 = vpop.xlane.xlu0 %798  ;;  %v402_v52 = vsel %vm375_vm1, %v2491_v29, -1e+30  ;;  %v801_v55 = vpop.xlane.xlu1 %800 }
 0x12b   :  { %v1526_v44 = vadd.f32 %v1510_v36, %v799_v42  ;;  %v1527_v60 = vadd.f32 %v1511_v48, %v801_v55  ;;  %v137_v48 = vld [vmem:[%s3222_s0 + $0x78] sm:$0xff] }
 0x12c   :  { %v2508_v34 = vpop.f32.mrb[2].mxu0  ;;  %v2510_v35 = vpop.f32.mrb[2].mxu1 }
 0x12d   :  { %v2512_v37 = vpop.f32.mrb[3].mxu0  ;;  %v2514_v38 = vpop.f32.mrb[3].mxu1  ;;  %v397_v40 = vsel %vm375_vm1, %v2508_v34, -1e+30  ;;  %v405_v43 = vsel %vm375_vm1, %v2510_v35, -1e+30 }
 0x12e   :  { %410 = vmax.xlane.f32.xlu0 %v394_v39  ;;  %416 = vmax.xlane.f32.xlu1 %v397_v40  ;;  %1542 = vst.msk [vmem:[#allocation5] sm:$0xff] %vm3246_vm8, %v1526_v44  ;;  %v803_v54 = vpop.xlane.xlu0 %802  ;;  %v404_v56 = vsel %vm375_vm1, %v2514_v38, -1e+30  ;;  %v396_v13 = vsel %vm375_vm1, %v2512_v37, -1e+30  ;;  %1543 = vst.msk [vmem:[#allocation5 + $0x8] sm:$0xff] %vm3246_vm8, %v1527_v60  ;;  %v805_v17 = vpop.xlane.xlu1 %804 }
 0x12f   :  { %v1528_v59 = vadd.f32 %v1512_v47, %v803_v54  ;;  %v1529_v36 = vadd.f32 %v1513_v3, %v805_v17  ;;  %v2595_v54 = vld [vmem:[#allocation2 + $0x8] sm:$0xff]  ;;  %v2605_v3 = vld [vmem:[#allocation2 + $0x18] sm:$0xff] }
 0x130   :  { %v2529_v45 = vpop.f32.mrb[4].mxu0  ;;  %v2531_v46 = vpop.f32.mrb[4].mxu1  ;;  %3273 = vst [vmem:[#allocation9_spill] sm:$0xff] %v2605_v3 }
 0x131   :  { %v2536_v50 = vpop.f32.mrb[5].mxu0  ;;  %v2538_v51 = vpop.f32.mrb[5].mxu1  ;;  %v2546_v53 = vmul.f32 %v2529_v45, %v2534_v49  ;;  %1544 = vst.msk [vmem:[#allocation5 + $0x10] sm:$0xff] %vm3246_vm8, %v1528_v59  ;;  %v399_v23 = vsel %vm375_vm1, %v2529_v45, -1e+30  ;;  %1545 = vst.msk [vmem:[#allocation5 + $0x18] sm:$0xff] %vm3246_vm8, %v1529_v36 }
 0x132   :  { %426 = vmax.xlane.f32.xlu0 %v402_v52  ;;  %432 = vmax.xlane.f32.xlu1 %v405_v43  ;;  %v807_v16 = vpop.xlane.xlu0 %806  ;;  %v398_v30 = vsel %vm375_vm1, %v2536_v50, -1e+30  ;;  %v407_v39 = vsel %vm375_vm1, %v2531_v46, -1e+30  ;;  %v406_v40 = vsel %vm375_vm1, %v2538_v51, -1e+30 }
 0x133   :  { %v1530_v31 = vadd.f32 %v1514_v1, %v807_v16  ;;  %v2593_v52 = vld [vmem:[#allocation2 + $0x48] sm:$0xff]  ;;  %v2603_v1 = vld [vmem:[#allocation2] sm:$0xff] }
 0x134   :  { %v2551_v61 = vpop.f32.mrb[6].mxu0  ;;  %v2553_v0 = vpop.f32.mrb[6].mxu1  ;;  %v2623_v36 = vld [vmem:[#allocation2 + $0x40] sm:$0xff] }
 0x135   :  { %v2555_v7 = vpop.f32.mrb[7].mxu0  ;;  %v2557_v10 = vpop.f32.mrb[7].mxu1  ;;  %1546 = vst.msk [vmem:[#allocation5 + $0x20] sm:$0xff] %vm3246_vm8, %v1530_v31  ;;  %v401_v42 = vsel %vm375_vm1, %v2551_v61, -1e+30  ;;  %v2664_v16 = vld [vmem:[#allocation2 + $0x20] sm:$0xff] }
 0x136   :  { %430 = vmax.xlane.f32.xlu0 %v404_v56  ;;  %414 = vmax.xlane.f32.xlu1 %v396_v13  ;;  %v400_v43 = vsel %vm375_vm1, %v2555_v7, -1e+30  ;;  %v409_v44 = vsel %vm375_vm1, %v2553_v0, -1e+30  ;;  %v408_v47 = vsel %vm375_vm1, %v2557_v10, -1e+30 }
 0x137   :  { %3283 = vst [vmem:[#allocation19_spill] sm:$0xff] %v2664_v16  ;;  %v2700_v13 = vld [vmem:[#allocation2 + $0x38] sm:$0xff] }
 0x138   :  { %3290 = vst [vmem:[#allocation26_spill] sm:$0xff] %v2700_v13 }
 0x13a   :  { %420 = vmax.xlane.f32.xlu1 %v399_v23  ;;  %418 = vmax.xlane.f32.xlu0 %v398_v30 }
 0x13e   :  { %436 = vmax.xlane.f32.xlu1 %v407_v39  ;;  %434 = vmax.xlane.f32.xlu0 %v406_v40  ;;  %v2625_v39 = vld [vmem:[#allocation2 + $0x58] sm:$0xff]  ;;  %v2662_v40 = vld [vmem:[#allocation2 + $0x28] sm:$0xff] }
 0x13f   :  { %3275 = vst [vmem:[#allocation11_spill] sm:$0xff] %v2625_v39  ;;  %3282 = vst [vmem:[#allocation18_spill] sm:$0xff] %v2662_v40 }
 0x142   :  { %424 = vmax.xlane.f32.xlu1 %v401_v42  ;;  %422 = vmax.xlane.f32.xlu0 %v400_v43 }
 0x146   :  { %440 = vmax.xlane.f32.xlu1 %v409_v44  ;;  %438 = vmax.xlane.f32.xlu0 %v408_v47 }
 0x15c   :  { %648 = vperm.xlu0 %1983, %v137_v48  }
 0x1b7   :  { %v429_v55 = vpop.xlane.xlu1 %428  ;;  %v413_v56 = vpop.xlane.xlu0 %412 }
 0x1b8   :  { %v2598_v59 = vmax.f32 %v2593_v52, %v429_v55  ;;  %v2601_v60 = vmax.f32 %v2595_v54, %v413_v56  ;;  %v2642_v55 = vld [vmem:[#allocation2 + $0x50] sm:$0xff] }
 0x1b9   :  { %3278 = vst [vmem:[#allocation14_spill] sm:$0xff] %v2642_v55  ;;  %v2644_v56 = vld [vmem:[#allocation2 + $0x10] sm:$0xff] }
 0x1ba   :  { %1567 = vst.msk [vmem:[#allocation2 + $0x48] sm:$0xff] %vm3246_vm8, %v2598_v59  ;;  %1559 = vst.msk [vmem:[#allocation2 + $0x8] sm:$0xff] %vm3246_vm8, %v2601_v60  ;;  %505 = vperm.xlu0 %1983, %v2598_v59   ;;  %465 = vperm.xlu1 %1982, %v2601_v60  }
 0x1bb   :  { %v411_v17 = vpop.xlane.xlu0 %410  ;;  %v417_v23 = vpop.xlane.xlu1 %416  ;;  %3279 = vst [vmem:[#allocation15_spill] sm:$0xff] %v2644_v56 }
 0x1bc   :  { %v2618_v30 = vmax.f32 %v2603_v1, %v411_v17  ;;  %v2621_v31 = vmax.f32 %v2605_v3, %v417_v23  ;;  %v2681_v23 = vld [vmem:[#allocation2 + $0x68] sm:$0xff]  ;;  %v2722_v3 = vld [vmem:[#allocation2 + $0x70] sm:$0xff] }
 0x1bd   :  { %3286 = vst [vmem:[#allocation22_spill] sm:$0xff] %v2681_v23  ;;  %3295 = vst [vmem:[#allocation31_spill] sm:$0xff] %v2722_v3 }
 0x1be   :  { %3274 = vst [vmem:[#allocation10_spill] sm:$0xff] %v2621_v31  ;;  %1558 = vst.msk [vmem:[#allocation2] sm:$0xff] %vm3246_vm8, %v2618_v30  ;;  %460 = vperm.xlu0 %1983, %v2618_v30  }
 0x1bf   :  { %1561 = vst.msk [vmem:[#allocation2 + $0x18] sm:$0xff] %vm3246_vm8, %v2621_v31  ;;  %v427_v43 = vpop.xlane.xlu0 %426  ;;  %v433_v44 = vpop.xlane.xlu1 %432 }
 0x1c0   :  { %v2637_v47 = vmax.f32 %v2623_v36, %v427_v43  ;;  %v2640_v48 = vmax.f32 %v2625_v39, %v433_v44 }
 0x1c2   :  { %3276 = vst [vmem:[#allocation12_spill] sm:$0xff] %v2637_v47  ;;  %3277 = vst [vmem:[#allocation13_spill] sm:$0xff] %v2640_v48  ;;  %500 = vperm.xlu1 %1982, %v2637_v47   ;;  %515 = vperm.xlu0 %1983, %v2640_v48  }
 0x1c3   :  { %1566 = vst.msk [vmem:[#allocation2 + $0x40] sm:$0xff] %vm3246_vm8, %v2637_v47  ;;  %1569 = vst.msk [vmem:[#allocation2 + $0x58] sm:$0xff] %vm3246_vm8, %v2640_v48  ;;  %v431_v43 = vpop.xlane.xlu0 %430  ;;  %v415_v44 = vpop.xlane.xlu1 %414 }
 0x1c4   :  { %v2657_v42 = vmax.f32 %v2642_v55, %v431_v43  ;;  %v2660_v17 = vmax.f32 %v2644_v56, %v415_v44  ;;  %v2683_v55 = vld [vmem:[#allocation2 + $0x60] sm:$0xff] }
 0x1c5   :  { %3287 = vst [vmem:[#allocation23_spill] sm:$0xff] %v2683_v55 }
 0x1c6   :  { %3280 = vst [vmem:[#allocation16_spill] sm:$0xff] %v2657_v42  ;;  %3281 = vst [vmem:[#allocation17_spill] sm:$0xff] %v2660_v17  ;;  %475 = vperm.xlu1 %1982, %v2621_v31  }
 0x1c7   :  { %1568 = vst.msk [vmem:[#allocation2 + $0x50] sm:$0xff] %vm3246_vm8, %v2657_v42  ;;  %1560 = vst.msk [vmem:[#allocation2 + $0x10] sm:$0xff] %vm3246_vm8, %v2660_v17  ;;  %v421_v43 = vpop.xlane.xlu1 %420  ;;  %v419_v44 = vpop.xlane.xlu0 %418 }
 0x1c8   :  { %v2676_v4 = vmax.f32 %v2662_v40, %v421_v43  ;;  %v2679_v48 = vmax.f32 %v2664_v16, %v419_v44  ;;  %v2702_v40 = vld [vmem:[#allocation2 + $0x30] sm:$0xff] }
 0x1c9   :  { %3291 = vst [vmem:[#allocation27_spill] sm:$0xff] %v2702_v40 }
 0x1ca   :  { %3284 = vst [vmem:[#allocation20_spill] sm:$0xff] %v2676_v4  ;;  %3285 = vst [vmem:[#allocation21_spill] sm:$0xff] %v2679_v48  ;;  %470 = vperm.xlu1 %1982, %v2660_v17  }
 0x1cb   :  { %1563 = vst.msk [vmem:[#allocation2 + $0x28] sm:$0xff] %vm3246_vm8, %v2676_v4  ;;  %1562 = vst.msk [vmem:[#allocation2 + $0x20] sm:$0xff] %vm3246_vm8, %v2679_v48  ;;  %v437_v43 = vpop.xlane.xlu1 %436  ;;  %v435_v44 = vpop.xlane.xlu0 %434 }
 0x1cc   :  { %v2695_v39 = vmax.f32 %v2681_v23, %v437_v43  ;;  %v2698_v31 = vmax.f32 %v2683_v55, %v435_v44  ;;  %v2720_v23 = vld [vmem:[#allocation2 + $0x78] sm:$0xff]  ;;  %v337_v55 = vadd.s32 120, %v2272_v57  ;;  %v3300_v43 = vmov 0.0  }
 0x1cd   :  { %3294 = vst [vmem:[#allocation30_spill] sm:$0xff] %v2720_v23 }
 0x1ce   :  { %3288 = vst [vmem:[#allocation24_spill] sm:$0xff] %v2695_v39  ;;  %3289 = vst [vmem:[#allocation25_spill] sm:$0xff] %v2698_v31  ;;  %510 = vperm.xlu1 %1982, %v2657_v42   ;;  %525 = vperm.xlu0 %1983, %v2695_v39   ;;  %vm374_vm15 = vcmp.ne.s32.totalorder %v337_v55, %v2274_v58 }
 0x1cf   :  { %1571 = vst.msk [vmem:[#allocation2 + $0x68] sm:$0xff] %vm3246_vm8, %v2695_v39  ;;  %1570 = vst.msk [vmem:[#allocation2 + $0x60] sm:$0xff] %vm3246_vm8, %v2698_v31  ;;  %v425_v44 = vpop.xlane.xlu1 %424  ;;  %v423_v56 = vpop.xlane.xlu0 %422 }
 0x1d0   :  { %v2715_v16 = vmax.f32 %v2700_v13, %v425_v44  ;;  %v2718_v17 = vmax.f32 %v2702_v40, %v423_v56  ;;  %vm2754_vm2 = vmand %vm374_vm15, %vm375_vm1 }
 0x1d2   :  { %3292 = vst [vmem:[#allocation28_spill] sm:$0xff] %v2715_v16  ;;  %3293 = vst [vmem:[#allocation29_spill] sm:$0xff] %v2718_v17  ;;  %485 = vperm.xlu1 %1982, %v2676_v4  }
 0x1d3   :  { %1565 = vst.msk [vmem:[#allocation2 + $0x38] sm:$0xff] %vm3246_vm8, %v2715_v16  ;;  %1564 = vst.msk [vmem:[#allocation2 + $0x30] sm:$0xff] %vm3246_vm8, %v2718_v17  ;;  %v441_v56 = vpop.xlane.xlu1 %440  ;;  %v439_v44 = vpop.xlane.xlu0 %438 }
 0x1d4   :  { %v2735_v42 = vmax.f32 %v2720_v23, %v441_v56  ;;  %v2738_v39 = vmax.f32 %v2722_v3, %v439_v44  ;;  %v3298_v56 = vmov 0  ;;  %v328_v3 = vadd.s32 48, %v2272_v57 }
 0x1d5   :  { %v3299_v56 = vsel %vm2754_vm2, 4294967295, %v3298_v56  ;;  %v332_v23 = vadd.s32 80, %v2272_v57 }
 0x1d6   :  { %3296 = vst [vmem:[#allocation32_spill] sm:$0xff] %v2735_v42  ;;  %3297 = vst [vmem:[#allocation33_spill] sm:$0xff] %v2738_v39  ;;  %480 = vperm.xlu1 %1982, %v2679_v48   ;;  %535 = vperm.xlu0 %1983, %v2735_v42   ;;  %vm365_vm7 = vcmp.ne.s32.totalorder %v328_v3, %v2274_v58  ;;  %v334_v3 = vadd.s32 96, %v2272_v57 }
 0x1d7   :  { %1573 = vst.msk [vmem:[#allocation2 + $0x78] sm:$0xff] %vm3246_vm8, %v2735_v42  ;;  %1572 = vst.msk [vmem:[#allocation2 + $0x70] sm:$0xff] %vm3246_vm8, %v2738_v39  ;;  %v3301_v42 = vmov 0  ;;  %vm664_vm8 = vcmp.eq.s32.totalorder %v2477_v22, %v2285_v62  ;;  %v3307_v22 = vmov 0 }
 0x1d8   :  { %vm2778_vm11 = vmand %vm365_vm7, %vm375_vm1  ;;  %vm369_vm7 = vcmp.ne.s32.totalorder %v332_v23, %v2274_v58  ;;  %v336_v23 = vadd.s32 112, %v2272_v57 }
 0x1d9   :  { %v3302_v42 = vsel %vm2778_vm11, 4294967295, %v3301_v42  ;;  %vm676_vm15 = vmand %vm660_vm10, %vm2778_vm11 }
 0x1da   :  { %520 = vperm.xlu1 %1982, %v2698_v31   ;;  %vm373_vm11 = vcmp.ne.s32.totalorder %v336_v23, %v2274_v58  ;;  %v329_v23 = vadd.s32 56, %v2272_v57  ;;  %v3311_v31 = vmov 0 }
 0x1db   :  { %v649_v44 = vpop.permute.xlu0 %648  ;;  %vm2837_vm0 = vmand %vm373_vm11, %vm375_vm1  ;;  %vm661_vm11 = vcmp.eq.s32.totalorder %v2471_v19, %v2285_v62 }
 0x1dc   :  { %vm669_vm4 = vcmp.eq.s32.totalorder %v649_v44, %v2285_v62  ;;  %v330_v44 = vadd.s32 64, %v2272_v57 }
 0x1dd   :  { %vm685_vm5 = vmand %vm669_vm4, %vm2754_vm2  ;;  %vm662_vm4 = vcmp.eq.s32.totalorder %v2473_v20, %v2285_v62  ;;  %vm371_vm2 = vcmp.ne.s32.totalorder %v334_v3, %v2274_v58 }
 0x1de   :  { %495 = vperm.xlu1 %1982, %v2715_v16   ;;  %v2763_v13 = vsel %vm685_vm5, 1.0, %v3300_v43  ;;  %vm367_vm14 = vcmp.ne.s32.totalorder %v330_v44, %v2274_v58  ;;  %v2797_v44 = vsel %vm676_vm15, 1.0, %v3300_v43  ;;  %v750_v16 = vmul.f32 %v2307_v5, %v2489_v28 }
 0x1df   :  { %v2767_v55 = vmul.f32 %v2553_v0, %v2763_v13  ;;  %vm2790_vm5 = vmand %vm367_vm14, %vm375_vm1  ;;  %v752_v5 = vmul.f32 %v2333_v11, %v2512_v37  ;;  %v754_v11 = vmul.f32 %v2353_v15, %v2536_v50 }
 0x1e0   :  { %vm678_vm10 = vmand %vm662_vm4, %vm2790_vm5  ;;  %vm666_vm4 = vcmp.eq.s32.totalorder %v2482_v25, %v2285_v62  ;;  %v3309_v25 = vmov 0 }
 0x1e1   :  { %vm2806_vm14 = vmand %vm369_vm7, %vm375_vm1  ;;  %v3310_v25 = vsel %vm2837_vm0, 4294967295, %v3309_v25 }
 0x1e2   :  { %490 = vperm.xlu1 %1982, %v2718_v17   ;;  %vm680_vm15 = vmand %vm664_vm8, %vm2806_vm14  ;;  %vm668_vm8 = vcmp.eq.s32.totalorder %v2524_v41, %v2285_v62  ;;  %v331_v41 = vadd.s32 72, %v2272_v57 }
 0x1e3   :  { %vm2822_vm7 = vmand %vm371_vm2, %vm375_vm1  ;;  %v2828_v3 = vsel %vm680_vm15, 1.0, %v3300_v43  ;;  %vm366_vm15 = vcmp.ne.s32.totalorder %v329_v23, %v2274_v58  ;;  %v333_v23 = vadd.s32 88, %v2272_v57 }
 0x1e4   :  { %v3308_v22 = vsel %vm2822_vm7, 4294967295, %v3307_v22  ;;  %vm684_vm2 = vmand %vm668_vm8, %vm2837_vm0 }
 0x1e5   :  { %v2849_v40 = vsel %vm684_vm2, 1.0, %v3300_v43  ;;  %vm663_vm2 = vcmp.eq.s32.totalorder %v2475_v21, %v2285_v62  ;;  %vm370_vm0 = vcmp.ne.s32.totalorder %v333_v23, %v2274_v58 }
 0x1e6   :  { %530 = vperm.xlu1 %1982, %v2738_v39   ;;  %v2813_v39 = vsel %vm678_vm10, 1.0, %v3300_v43  ;;  %vm682_vm10 = vmand %vm666_vm4, %vm2822_vm7  ;;  %vm667_vm7 = vcmp.eq.s32.totalorder %v2500_v32, %v2285_v62 }
 0x1e7   :  { %v2842_v17 = vsel %vm682_vm10, 1.0, %v3300_v43  ;;  %vm2860_vm4 = vmand %vm366_vm15, %vm375_vm1  ;;  %vm368_vm10 = vcmp.ne.s32.totalorder %v331_v41, %v2274_v58 }
 0x1e8   :  { %v3312_v31 = vsel %vm2860_vm4, 4294967295, %v3311_v31  ;;  %vm677_vm8 = vmand %vm661_vm11, %vm2860_vm4  ;;  %vm665_vm4 = vcmp.eq.s32.totalorder %v2480_v24, %v2285_v62  ;;  %v753_v62 = vmul.f32 %v2508_v34, %v2350_v14 }
 0x1e9   :  { %vm2875_vm15 = vmand %vm368_vm10, %vm375_vm1 }
 0x1ea   :  { %vm679_vm11 = vmand %vm663_vm2, %vm2875_vm15 }
 0x1eb   :  { %vm2893_vm10 = vmand %vm370_vm0, %vm375_vm1 }
 0x1ec   :  { %vm681_vm2 = vmand %vm665_vm4, %vm2893_vm10 }
 0x1ed   :  { %v2913_v24 = vsel %vm681_vm2, 1.0, %v3300_v43 }
 0x1f5   :  { %810 = vadd.xlane.f32.xlu0 %v2797_v44 }
 0x1f9   :  { %814 = vadd.xlane.f32.xlu0 %v2813_v39 }
 0x1fd   :  { %818 = vadd.xlane.f32.xlu0 %v2828_v3 }
 0x201   :  { %822 = vadd.xlane.f32.xlu0 %v2842_v17 }
 0x205   :  { %826 = vadd.xlane.f32.xlu0 %v2849_v40 }
 0x209   :  { %766 = vadd.xlane.f32.xlu0 %v750_v16  ;;  %v335_v16 = vadd.s32 104, %v2272_v57  ;;  %v2899_v57 = vsel %vm679_vm11, 1.0, %v3300_v43 }
 0x20a   :  { %808 = vadd.xlane.f32.xlu1 %v2534_v49  ;;  %v2882_v49 = vsel %vm677_vm8, 1.0, %v3300_v43 }
 0x20b   :  { %vm372_vm8 = vcmp.ne.s32.totalorder %v335_v16, %v2274_v58  ;;  %v751_v58 = vmul.f32 %v2485_v26, %v2330_v9 }
 0x20c   :  { %vm2908_vm0 = vmand %vm372_vm8, %vm375_vm1  ;;  %vm3319_vm1 = vnez %v3270_v12 }
 0x20d   :  { %770 = vadd.xlane.f32.xlu0 %v752_v5  ;;  %vm683_vm11 = vmand %vm667_vm7, %vm2908_vm0 }
 0x20e   :  { %812 = vadd.xlane.f32.xlu1 %v2882_v49  ;;  %v2919_v41 = vsel %vm683_vm11, 1.0, %v3300_v43 }
 0x211   :  { %774 = vadd.xlane.f32.xlu0 %v754_v11 }
 0x212   :  { %816 = vadd.xlane.f32.xlu1 %v2899_v57 }
 0x216   :  { %820 = vadd.xlane.f32.xlu1 %v2913_v24 }
 0x21a   :  { %824 = vadd.xlane.f32.xlu1 %v2919_v41 }
 0x21e   :  { %828 = vadd.xlane.f32.xlu1 %v2763_v13 }
 0x222   :  { %768 = vadd.xlane.f32.xlu1 %v751_v58 }
 0x226   :  { %772 = vadd.xlane.f32.xlu1 %v753_v62 }
 0x22a   :  { %776 = vadd.xlane.f32.xlu1 %v2546_v53 }
 0x239   :  { %v506_v32 = vpop.permute.xlu0 %505  ;;  %v466_v23 = vpop.permute.xlu1 %465 }
 0x23a   :  { %v547_v5 = vsub.f32 %v2487_v27, %v506_v32  ;;  %v539_v43 = vsub.f32 %v2485_v26, %v466_v23 }
 0x23c   :  { %v572_v16 = vmul.f32 1.442695, %v547_v5  ;;  %v556_v11 = vmul.f32 1.442695, %v539_v43 }
 0x23d   :  { %v461_v48 = vpop.permute.xlu0 %460 }
 0x23e   :  { %1984 = vpow2.f32 %v572_v16  ;;  %v538_v13 = vsub.f32 %v2489_v28, %v461_v48 }
 0x23f   :  { %1986 = vpow2.f32 %v556_v11 }
 0x240   :  { %v554_v9 = vmul.f32 1.442695, %v538_v13 }
 0x241   :  { %v501_v58 = vpop.permute.xlu1 %500  ;;  %v516_v4 = vpop.permute.xlu0 %515 }
 0x242   :  { %1988 = vpow2.f32 %v554_v9  ;;  %v546_v14 = vsub.f32 %v2491_v29, %v501_v58  ;;  %v549_v62 = vsub.f32 %v2510_v35, %v516_v4 }
 0x244   :  { %v570_v53 = vmul.f32 1.442695, %v546_v14  ;;  %v576_v23 = vmul.f32 1.442695, %v549_v62 }
 0x245   :  { %v476_v47 = vpop.permute.xlu1 %475 }
 0x246   :  { %1990 = vpow2.f32 %v570_v53  ;;  %v541_v26 = vsub.f32 %v2508_v34, %v476_v47 }
 0x248   :  { %v1985_v32 = vpop.eup %1984  ;;  %v560_v5 = vmul.f32 1.442695, %v541_v26 }
 0x249   :  { %v1987_v43 = vpop.eup %1986  ;;  %v471_v16 = vpop.permute.xlu1 %470  ;;  %v595_v28 = vsel %vm2875_vm15, %v1985_v32, 0.0 }
 0x24a   :  { %1992 = vpow2.f32 %v560_v5  ;;  %v540_v48 = vsub.f32 %v2512_v37, %v471_v16  ;;  %736 = vadd.xlane.f32.xlu1 %v595_v28  ;;  %v587_v11 = vsel %vm2299_vm6, %v1987_v43, 0.0  ;;  %vm3321_vm6 = vnez %v3312_v31 }
 0x24b   :  { %720 = vadd.xlane.f32.xlu0 %v587_v11  ;;  %1994 = vpow2.f32 %v576_v23  ;;  %v756_v31 = vmul.f32 %v2797_v44, %v2555_v7 }
 0x24c   :  { %v1989_v4 = vpop.eup %1988  ;;  %v558_v13 = vmul.f32 1.442695, %v540_v48 }
 0x24d   :  { %v511_v34 = vpop.permute.xlu1 %510  ;;  %v526_v47 = vpop.permute.xlu0 %525  ;;  %v586_v9 = vsel %vm2290_vm3, %v1989_v4, 0.0  ;;  %vm3320_vm3 = vnez %v3308_v22  ;;  %v757_v22 = vmul.f32 %v2551_v61, %v2882_v49  ;;  %v762_v49 = vmul.f32 %v2842_v17, %v2538_v51 }
 0x24e   :  { %1996 = vpow2.f32 %v558_v13  ;;  %v548_v19 = vsub.f32 %v2514_v38, %v511_v34  ;;  %718 = vadd.xlane.f32.xlu1 %v586_v9  ;;  %v551_v37 = vsub.f32 %v2531_v46, %v526_v47 }
 0x250   :  { %v1991_v58 = vpop.eup %1990  ;;  %v574_v14 = vmul.f32 1.442695, %v548_v19  ;;  %v580_v32 = vmul.f32 1.442695, %v551_v37 }
 0x251   :  { %v486_v53 = vpop.permute.xlu1 %485  ;;  %v594_v2 = vsel %vm2790_vm5, %v1991_v58, 0.0  ;;  %vm3325_vm5 = vcmask 7168  }
 0x252   :  { %1998 = vpow2.f32 %v574_v14  ;;  %v543_v62 = vsub.f32 %v2529_v45, %v486_v53  ;;  %734 = vadd.xlane.f32.xlu0 %v594_v2  ;;  %vm3327_vm7 = vmmov %vm3325_vm5 }
 0x253   :  { %vm3328_vm4 = vmmov %vm3325_vm5 }
 0x254   :  { %v1993_v26 = vpop.eup %1992  ;;  %v564_v63 = vmul.f32 1.442695, %v543_v62  ;;  %vm3329_vm15 = vmmov %vm3328_vm4 }
 0x255   :  { %v481_v23 = vpop.permute.xlu1 %480  ;;  %v589_v5 = vsel %vm2320_vm12, %v1993_v26, 0.0  ;;  %v1995_v43 = vpop.eup %1994  ;;  %vm3323_vm12 = vnez %v3299_v56  ;;  %v758_v56 = vmul.f32 %v2813_v39, %v2491_v29  ;;  %v1518_v29 = vld [vmem:[#allocation5 + $0x40] sm:$0xff]  ;;  %vm3331_vm8 = vmmov %vm3328_vm4 }
 0x256   :  { %2000 = vpow2.f32 %v564_v63  ;;  %v542_v16 = vsub.f32 %v2536_v50, %v481_v23  ;;  %724 = vadd.xlane.f32.xlu1 %v589_v5  ;;  %v536_v48 = vpop.permute.xlu0 %535  ;;  %v597_v4 = vsel %vm2893_vm10, %v1995_v43, 0.0  ;;  %vm3330_vm10 = vmmov %vm3328_vm4 }
 0x257   :  { %2002 = vpow2.f32 %v580_v32  ;;  %v553_v50 = vsub.f32 %v2553_v0, %v536_v48  ;;  %vm3332_vm2 = vmmov %vm3328_vm4 }
 0x258   :  { %v1997_v28 = vpop.eup %1996  ;;  %v562_v18 = vmul.f32 1.442695, %v542_v16 }
 0x259   :  { %v521_v11 = vpop.permute.xlu1 %520  ;;  %v588_v45 = vsel %vm2311_vm9, %v1997_v28, 0.0  ;;  %v584_v21 = vmul.f32 1.442695, %v553_v50  ;;  %vm3322_vm9 = vnez %v3302_v42  ;;  %v759_v42 = vmul.f32 %v2487_v27, %v2899_v57 }
 0x25a   :  { %2004 = vpow2.f32 %v562_v18  ;;  %v550_v8 = vsub.f32 %v2538_v51, %v521_v11  ;;  %722 = vadd.xlane.f32.xlu0 %v588_v45  ;;  %740 = vadd.xlane.f32.xlu1 %v597_v4  ;;  %v761_v45 = vmul.f32 %v2510_v35, %v2913_v24  ;;  %v1522_v24 = vld [vmem:[#allocation5 + $0x60] sm:$0xff] }
 0x25c   :  { %v1999_v13 = vpop.eup %1998  ;;  %v578_v34 = vmul.f32 1.442695, %v550_v8  ;;  %v1462_v8 = vld [vmem:[#allocation4] sm:$0xff] }
 0x25d   :  { %v496_v47 = vpop.permute.xlu1 %495  ;;  %v596_v9 = vsel %vm2806_vm14, %v1999_v13, 0.0  ;;  %vm3326_vm14 = vmmov %vm3325_vm5 }
 0x25e   :  { %2006 = vpow2.f32 %v578_v34  ;;  %v545_v6 = vsub.f32 %v2551_v61, %v496_v47  ;;  %738 = vadd.xlane.f32.xlu0 %v596_v9  ;;  %v763_v61 = vmul.f32 %v2531_v46, %v2919_v41  ;;  %v764_v46 = vmul.f32 %v2849_v40, %v2557_v10  ;;  %v1524_v41 = vld [vmem:[#allocation5 + $0x70] sm:$0xff]  ;;  %v1517_v9 = vld [vmem:[#allocation5 + $0x38] sm:$0xff] }
 0x25f   :  { %v1464_v47 = vld [vmem:[#allocation4 + $0x10] sm:$0xff] }
 0x260   :  { %v2001_v19 = vpop.eup %2000  ;;  %v568_v58 = vmul.f32 1.442695, %v545_v6 }
 0x261   :  { %v491_v14 = vpop.permute.xlu1 %490  ;;  %v591_v37 = vsel %vm2504_vm13, %v2001_v19, 0.0  ;;  %v2003_v53 = vpop.eup %2002  ;;  %vm3324_vm13 = vnez %v3310_v25  ;;  %v760_v25 = vmul.f32 %v2828_v3, %v2514_v38  ;;  %v1520_v38 = vld [vmem:[#allocation5 + $0x50] sm:$0xff] }
 0x262   :  { %2008 = vpow2.f32 %v568_v58  ;;  %v544_v0 = vsub.f32 %v2555_v7, %v491_v14  ;;  %728 = vadd.xlane.f32.xlu1 %v591_v37  ;;  %v599_v32 = vsel %vm2908_vm0, %v2003_v53, 0.0  ;;  %v1516_v7 = vld [vmem:[#allocation5 + $0x30] sm:$0xff]  ;;  %v1466_v14 = vld [vmem:[#allocation4 + $0x20] sm:$0xff]  ;;  %v1519_v37 = vld [vmem:[#allocation5 + $0x48] sm:$0xff] }
 0x263   :  { %2010 = vpow2.f32 %v584_v21  ;;  %vm3333_vm0 = vmmov %vm3332_vm2 }
 0x264   :  { %v2005_v2 = vpop.eup %2004  ;;  %v566_v20 = vmul.f32 1.442695, %v544_v0  ;;  %vm3334_vm11 = vmmov %vm3333_vm0 }
 0x265   :  { %v531_v62 = vpop.permute.xlu1 %530  ;;  %v590_v26 = vsel %vm3319_vm1, %v2005_v2, 0.0  ;;  %vm3335_vm1 = vmmov %vm3333_vm0 }
 0x266   :  { %2012 = vpow2.f32 %v566_v20  ;;  %v552_v63 = vsub.f32 %v2557_v10, %v531_v62  ;;  %726 = vadd.xlane.f32.xlu0 %v590_v26  ;;  %744 = vadd.xlane.f32.xlu1 %v599_v32  ;;  %v1515_v10 = vld [vmem:[#allocation5 + $0x28] sm:$0xff]  ;;  %v1521_v62 = vld [vmem:[#allocation5 + $0x58] sm:$0xff] }
 0x268   :  { %v2007_v33 = vpop.eup %2006  ;;  %v582_v23 = vmul.f32 1.442695, %v552_v63  ;;  %v1523_v63 = vld [vmem:[#allocation5 + $0x68] sm:$0xff] }
 0x269   :  { %v598_v5 = vsel %vm3320_vm3, %v2007_v33, 0.0  ;;  %vm3336_vm3 = vmmov %vm3333_vm0 }
 0x26a   :  { %2014 = vpow2.f32 %v582_v23  ;;  %742 = vadd.xlane.f32.xlu0 %v598_v5  ;;  %v1525_v5 = vld [vmem:[#allocation5 + $0x78] sm:$0xff] }
 0x26c   :  { %v2009_v43 = vpop.eup %2008 }
 0x26d   :  { %v593_v12 = vsel %vm3321_vm6, %v2009_v43, 0.0  ;;  %v2011_v16 = vpop.eup %2010  ;;  %vm3337_vm6 = vmmov %vm3333_vm0 }
 0x26e   :  { %732 = vadd.xlane.f32.xlu1 %v593_v12  ;;  %v601_v18 = vsel %vm3323_vm12, %v2011_v16, 0.0  ;;  %v1463_v16 = vld [vmem:[#allocation4 + $0x8] sm:$0xff]  ;;  %vm3339_vm12 = vmmov %vm3333_vm0 }
 0x270   :  { %v2013_v15 = vpop.eup %2012 }
 0x271   :  { %v592_v28 = vsel %vm3322_vm9, %v2013_v15, 0.0  ;;  %vm3338_vm9 = vmmov %vm3333_vm0 }
 0x272   :  { %730 = vadd.xlane.f32.xlu0 %v592_v28  ;;  %748 = vadd.xlane.f32.xlu1 %v601_v18  ;;  %v1465_v18 = vld [vmem:[#allocation4 + $0x18] sm:$0xff] }
 0x274   :  { %v2015_v48 = vpop.eup %2014 }
 0x275   :  { %v600_v11 = vsel %vm3324_vm13, %v2015_v48, 0.0  ;;  %vm3340_vm13 = vmmov %vm3333_vm0 }
 0x276   :  { %746 = vadd.xlane.f32.xlu0 %v600_v11  ;;  %780 = vadd.xlane.f32.xlu1 %v757_v22  ;;  %v1467_v11 = vld [vmem:[#allocation4 + $0x28] sm:$0xff] }
 0x27a   :  { %778 = vadd.xlane.f32.xlu0 %v756_v31  ;;  %784 = vadd.xlane.f32.xlu1 %v759_v42 }
 0x27e   :  { %782 = vadd.xlane.f32.xlu0 %v758_v56  ;;  %788 = vadd.xlane.f32.xlu1 %v761_v45  ;;  %v3342_v56 = vsub.f32 %v2593_v52, %v2598_v59 }
 0x280   :  { %v1383_v45 = vmul.f32 1.442695, %v3342_v56  ;;  %v1408_v56 = vld [vmem:[#allocation3 + $0x58] sm:$0xff] }
 0x282   :  { %786 = vadd.xlane.f32.xlu0 %v760_v25  ;;  %792 = vadd.xlane.f32.xlu1 %v763_v61  ;;  %v811_v27 = vpop.xlane.xlu0 %810  ;;  %v3343_v61 = vsub.f32 %v2595_v54, %v2601_v60  ;;  %2016 = vpow2.f32 %v1383_v45  ;;  %v3350_v60 = vld [vmem:[#allocation11_spill] sm:$0xff] }
 0x283   :  { %v1532_v44 = vadd.f32 %v1516_v7, %v811_v27  ;;  %v3344_v7 = vsub.f32 %v2603_v1, %v2618_v30  ;;  %v1398_v1 = vld [vmem:[#allocation3 + $0x8] sm:$0xff]  ;;  %v3353_v30 = vld [vmem:[#allocation15_spill] sm:$0xff] }
 0x284   :  { %v1367_v25 = vmul.f32 1.442695, %v3343_v61  ;;  %v1399_v45 = vld [vmem:[#allocation3 + $0x10] sm:$0xff]  ;;  %v1658_v61 = vld [vmem:[#allocation5 + $0x8] sm:$0xff] }
 0x285   :  { %1548 = vst.msk [vmem:[#allocation5 + $0x30] sm:$0xff] %vm3325_vm5, %v1532_v44  ;;  %vm3341_vm5 = vmmov %vm3333_vm0  ;;  %v1365_v27 = vmul.f32 1.442695, %v3344_v7  ;;  %v3345_v44 = vld [vmem:[#allocation12_spill] sm:$0xff]  ;;  %v3049_v7 = vld [vmem:[#allocation5] sm:$0xff] }
 0x286   :  { %790 = vadd.xlane.f32.xlu0 %v762_v49  ;;  %796 = vadd.xlane.f32.xlu1 %v2767_v55  ;;  %v815_v35 = vpop.xlane.xlu0 %814  ;;  %2018 = vpow2.f32 %v1367_v25  ;;  %v3346_v49 = vsub.f32 %v2623_v36, %v3345_v44  ;;  %v3373_v44 = vld [vmem:[#allocation25_spill] sm:$0xff] }
 0x287   :  { %v1534_v39 = vadd.f32 %v1518_v29, %v815_v35  ;;  %2020 = vpow2.f32 %v1365_v27  ;;  %v3347_v35 = vld [vmem:[#allocation9_spill] sm:$0xff]  ;;  %v3372_v27 = vld [vmem:[#allocation23_spill] sm:$0xff] }
 0x288   :  { %v1381_v29 = vmul.f32 1.442695, %v3346_v49  ;;  %v3374_v49 = vsub.f32 %v3372_v27, %v3373_v44 }
 0x289   :  { %1550 = vst.msk [vmem:[#allocation5 + $0x40] sm:$0xff] %vm3326_vm14, %v1534_v39  ;;  %v3348_v39 = vld [vmem:[#allocation10_spill] sm:$0xff]  ;;  %vm3359_vm14 = vmmov %vm3333_vm0 }
 0x28a   :  { %794 = vadd.xlane.f32.xlu0 %v764_v46  ;;  %v819_v3 = vpop.xlane.xlu0 %818  ;;  %v3349_v46 = vsub.f32 %v3347_v35, %v3348_v39  ;;  %2022 = vpow2.f32 %v1381_v29  ;;  %v1389_v29 = vmul.f32 1.442695, %v3374_v49  ;;  %v1409_v49 = vld [vmem:[#allocation3 + $0x60] sm:$0xff] }
 0x28b   :  { %v1536_v57 = vadd.f32 %v1520_v38, %v819_v3  ;;  %v1406_v38 = vld [vmem:[#allocation3 + $0x48] sm:$0xff]  ;;  %v3351_v3 = vld [vmem:[#allocation13_spill] sm:$0xff] }
 0x28c   :  { %v1371_v52 = vmul.f32 1.442695, %v3349_v46  ;;  %v2017_v59 = vpop.eup %2016 }
 0x28d   :  { %1552 = vst.msk [vmem:[#allocation5 + $0x50] sm:$0xff] %vm3327_vm7, %v1536_v57  ;;  %v3352_v57 = vsub.f32 %v3350_v60, %v3351_v3  ;;  %v1422_v36 = vmul.f32 %v2017_v59, %v1406_v38  ;;  %vm3360_vm7 = vmmov %vm3333_vm0  ;;  %v1674_v59 = vmax.f32 %v1658_v61, 1.0  ;;  %v1407_v60 = vld [vmem:[#allocation3 + $0x50] sm:$0xff]  ;;  %v1673_v3 = vmax.f32 %v3049_v7, 1.0 }
 0x28e   :  { %v823_v51 = vpop.xlane.xlu0 %822  ;;  %2024 = vpow2.f32 %v1371_v52 }
 0x28f   :  { %v1538_v17 = vadd.f32 %v1522_v24, %v823_v51  ;;  %v1387_v24 = vmul.f32 1.442695, %v3352_v57  ;;  %v3354_v51 = vld [vmem:[#allocation17_spill] sm:$0xff] }
 0x290   :  { %v2019_v54 = vpop.eup %2018 }
 0x291   :  { %1554 = vst.msk [vmem:[#allocation5 + $0x60] sm:$0xff] %vm3328_vm4, %v1538_v17  ;;  %v3355_v17 = vsub.f32 %v3353_v30, %v3354_v51  ;;  %2026 = vpow2.f32 %v1387_v24  ;;  %vm3364_vm4 = vmmov %vm3333_vm0  ;;  %v3377_v30 = vld [vmem:[#allocation28_spill] sm:$0xff] }
 0x292   :  { %v827_v55 = vpop.xlane.xlu0 %826 }
 0x293   :  { %v1540_v4 = vadd.f32 %v1524_v41, %v827_v55  ;;  %v1369_v41 = vmul.f32 1.442695, %v3355_v17  ;;  %v2021_v55 = vpop.eup %2020 }
 0x295   :  { %1556 = vst.msk [vmem:[#allocation5 + $0x70] sm:$0xff] %vm3329_vm15, %v1540_v4  ;;  %2028 = vpow2.f32 %v1369_v41  ;;  %vm3371_vm15 = vmmov %vm3333_vm0 }
 0x296   :  { %v767_v40 = vpop.xlane.xlu0 %766 }
 0x297   :  { %v1478_v13 = vadd.f32 %v1462_v8, %v767_v40  ;;  %v809_v50 = vpop.xlane.xlu1 %808  ;;  %v1414_v8 = vmul.f32 %v2019_v54, %v1398_v1  ;;  %v3376_v1 = vld [vmem:[#allocation26_spill] sm:$0xff] }
 0x298   :  { %v1531_v34 = vadd.f32 %v1515_v10, %v809_v50  ;;  %v1397_v10 = vld [vmem:[#allocation3] sm:$0xff]  ;;  %v3356_v50 = vld [vmem:[#allocation14_spill] sm:$0xff]  ;;  %v3378_v51 = vsub.f32 %v3376_v1, %v3377_v30 }
 0x299   :  { %1494 = vst.msk [vmem:[#allocation4] sm:$0xff] %vm3330_vm10, %v1478_v13  ;;  %vm3375_vm10 = vmmov %vm3333_vm0 }
 0x29a   :  { %1547 = vst.msk [vmem:[#allocation5 + $0x28] sm:$0xff] %vm3331_vm8, %v1531_v34  ;;  %v771_v6 = vpop.xlane.xlu0 %770  ;;  %v3357_v34 = vld [vmem:[#allocation16_spill] sm:$0xff]  ;;  %v1379_v17 = vmul.f32 1.442695, %v3378_v51  ;;  %vm3379_vm8 = vmmov %vm3333_vm0 }
 0x29b   :  { %v1480_v19 = vadd.f32 %v1464_v47, %v771_v6  ;;  %v813_v21 = vpop.xlane.xlu1 %812  ;;  %v3358_v47 = vsub.f32 %v3356_v50, %v3357_v34  ;;  %v1404_v51 = vld [vmem:[#allocation3 + $0x38] sm:$0xff] }
 0x29c   :  { %v1533_v58 = vadd.f32 %v1517_v9, %v813_v21  ;;  %v2023_v21 = vpop.eup %2022 }
 0x29d   :  { %1496 = vst.msk [vmem:[#allocation4 + $0x10] sm:$0xff] %vm3332_vm2, %v1480_v19  ;;  %v1385_v9 = vmul.f32 1.442695, %v3358_v47  ;;  %v1413_v19 = vmul.f32 %v2021_v55, %v1397_v10  ;;  %vm3380_vm2 = vmmov %vm3333_vm0  ;;  %v3382_v10 = vld [vmem:[#allocation29_spill] sm:$0xff]  ;;  %v3384_v47 = vld [vmem:[#allocation30_spill] sm:$0xff] }
 0x29e   :  { %1549 = vst.msk [vmem:[#allocation5 + $0x38] sm:$0xff] %vm3333_vm0, %v1533_v58  ;;  %v775_v53 = vpop.xlane.xlu0 %774 }
 0x29f   :  { %v1482_v0 = vadd.f32 %v1466_v14, %v775_v53  ;;  %v817_v2 = vpop.xlane.xlu1 %816  ;;  %v1405_v14 = vld [vmem:[#allocation3 + $0x40] sm:$0xff]  ;;  %2030 = vpow2.f32 %v1385_v9  ;;  %v3361_v53 = vld [vmem:[#allocation18_spill] sm:$0xff]  ;;  %v3385_v9 = vld [vmem:[#allocation32_spill] sm:$0xff] }
 0x2a0   :  { %v1535_v20 = vadd.f32 %v1519_v37, %v817_v2 }
 0x2a1   :  { %1498 = vst.msk [vmem:[#allocation4 + $0x20] sm:$0xff] %vm3334_vm11, %v1482_v0  ;;  %v3362_v0 = vld [vmem:[#allocation20_spill] sm:$0xff]  ;;  %vm3390_vm11 = vmmov %vm3333_vm0 }
 0x2a2   :  { %1551 = vst.msk [vmem:[#allocation5 + $0x48] sm:$0xff] %vm3335_vm1, %v1535_v20  ;;  %v3363_v2 = vsub.f32 %v3361_v53, %v3362_v0  ;;  %vm3391_vm1 = vmmov %vm3333_vm0 }
 0x2a3   :  { %v821_v26 = vpop.xlane.xlu1 %820 }
 0x2a4   :  { %v1537_v32 = vadd.f32 %v1521_v62, %v821_v26  ;;  %v1375_v20 = vmul.f32 1.442695, %v3363_v2  ;;  %v1421_v62 = vmul.f32 %v2023_v21, %v1405_v14  ;;  %v2025_v26 = vpop.eup %2024  ;;  %v3067_v14 = vld [vmem:[#allocation5 + $0x18] sm:$0xff]  ;;  %v1578_v2 = vld [vmem:[#allocation2 + $0x8] sm:$0xff] }
 0x2a6   :  { %1553 = vst.msk [vmem:[#allocation5 + $0x58] sm:$0xff] %vm3336_vm3, %v1537_v32  ;;  %2032 = vpow2.f32 %v1375_v20  ;;  %vm3392_vm3 = vmmov %vm3333_vm0 }
 0x2a7   :  { %v825_v33 = vpop.xlane.xlu1 %824 }
 0x2a8   :  { %v1539_v23 = vadd.f32 %v1523_v63, %v825_v33  ;;  %v1400_v63 = vld [vmem:[#allocation3 + $0x18] sm:$0xff]  ;;  %v3365_v33 = vld [vmem:[#allocation19_spill] sm:$0xff] }
 0x2aa   :  { %1555 = vst.msk [vmem:[#allocation5 + $0x68] sm:$0xff] %vm3337_vm6, %v1539_v23  ;;  %v3366_v23 = vld [vmem:[#allocation21_spill] sm:$0xff]  ;;  %vm3393_vm6 = vmmov %vm3333_vm0 }
 0x2ab   :  { %v829_v43 = vpop.xlane.xlu1 %828 }
 0x2ac   :  { %v1541_v12 = vadd.f32 %v1525_v5, %v829_v43  ;;  %v3367_v5 = vsub.f32 %v3365_v33, %v3366_v23  ;;  %v3070_v23 = vld [vmem:[#allocation5 + $0x10] sm:$0xff] }
 0x2ae   :  { %1557 = vst.msk [vmem:[#allocation5 + $0x78] sm:$0xff] %vm3338_vm9, %v1541_v12  ;;  %v1373_v43 = vmul.f32 1.442695, %v3367_v5  ;;  %v3387_v5 = vld [vmem:[#allocation31_spill] sm:$0xff]  ;;  %vm3394_vm9 = vmmov %vm3333_vm0 }
 0x2af   :  { %v769_v15 = vpop.xlane.xlu1 %768 }
 0x2b0   :  { %v1479_v28 = vadd.f32 %v1463_v16, %v769_v15  ;;  %v3368_v16 = vld [vmem:[#allocation22_spill] sm:$0xff]  ;;  %v3369_v15 = vld [vmem:[#allocation24_spill] sm:$0xff] }
 0x2b2   :  { %1495 = vst.msk [vmem:[#allocation4 + $0x8] sm:$0xff] %vm3339_vm12, %v1479_v28  ;;  %v3370_v28 = vsub.f32 %v3368_v16, %v3369_v15  ;;  %vm3395_vm12 = vmmov %vm3333_vm0 }
 0x2b3   :  { %v773_v48 = vpop.xlane.xlu1 %772 }
 0x2b4   :  { %v1481_v22 = vadd.f32 %v1465_v18, %v773_v48  ;;  %v1391_v18 = vmul.f32 1.442695, %v3370_v28  ;;  %v2027_v48 = vpop.eup %2026 }
 0x2b5   :  { %v1424_v39 = vmul.f32 %v2027_v48, %v1408_v56  ;;  %v1676_v48 = vmax.f32 %v3067_v14, 1.0 }
 0x2b6   :  { %1497 = vst.msk [vmem:[#allocation4 + $0x18] sm:$0xff] %vm3340_vm13, %v1481_v22  ;;  %vm3396_vm13 = vmmov %vm3333_vm0 }
 0x2b7   :  { %v777_v31 = vpop.xlane.xlu1 %776 }
 0x2b8   :  { %v1483_v42 = vadd.f32 %v1467_v11, %v777_v31  ;;  %v1416_v11 = vmul.f32 %v2025_v26, %v1400_v63  ;;  %v2029_v31 = vpop.eup %2028  ;;  %v1401_v26 = vld [vmem:[#allocation3 + $0x20] sm:$0xff] }
 0x2b9   :  { %v1415_v46 = vmul.f32 %v2029_v31, %v1399_v45  ;;  %v2031_v52 = vpop.eup %2030  ;;  %v1690_v45 = vld [vmem:[#allocation4 + $0x8] sm:$0xff] }
 0x2ba   :  { %1499 = vst.msk [vmem:[#allocation4 + $0x28] sm:$0xff] %vm3341_vm5, %v1483_v42  ;;  %v1423_v41 = vmul.f32 %v2031_v52, %v1407_v60  ;;  %v1689_v60 = vld [vmem:[#allocation4] sm:$0xff]  ;;  %vm3397_vm5 = vmmov %vm3333_vm0 }
 0x2d7   :  { %v737_v4 = vpop.xlane.xlu1 %736 }
 0x2d8   :  { %v1438_v40 = vadd.f32 %v1422_v36, %v737_v4  ;;  %v721_v13 = vpop.xlane.xlu0 %720  ;;  %v2033_v36 = vpop.eup %2032  ;;  %v1402_v4 = vld [vmem:[#allocation3 + $0x28] sm:$0xff] }
 0x2d9   :  { %v1430_v6 = vadd.f32 %v1414_v8, %v721_v13  ;;  %v3381_v8 = vld [vmem:[#allocation27_spill] sm:$0xff]  ;;  %v1418_v53 = vmul.f32 %v2033_v36, %v1402_v4  ;;  %v3087_v4 = vld [vmem:[#allocation5 + $0x40] sm:$0xff] }
 0x2da   :  { %1455 = vst.msk [vmem:[#allocation3 + $0x48] sm:$0xff] %vm3359_vm14, %v1438_v40  ;;  %v3383_v40 = vsub.f32 %v3381_v8, %v3382_v10  ;;  %vm3398_vm14 = vmmov %vm3333_vm0 }
 0x2db   :  { %1447 = vst.msk [vmem:[#allocation3 + $0x8] sm:$0xff] %vm3360_vm7, %v1430_v6  ;;  %v719_v58 = vpop.xlane.xlu1 %718  ;;  %v3386_v6 = vsub.f32 %v3384_v47, %v3385_v9  ;;  %vm3399_vm7 = vmmov %vm3333_vm0 }
 0x2dc   :  { %v1429_v37 = vadd.f32 %v1413_v19, %v719_v58  ;;  %v1377_v13 = vmul.f32 1.442695, %v3383_v40 }
 0x2dd   :  { %v1395_v19 = vmul.f32 1.442695, %v3386_v6 }
 0x2de   :  { %1446 = vst.msk [vmem:[#allocation3] sm:$0xff] %vm3364_vm4, %v1429_v37  ;;  %vm3400_vm4 = vmmov %vm3333_vm0 }
 0x2df   :  { %v735_v32 = vpop.xlane.xlu0 %734 }
 0x2e0   :  { %v1437_v12 = vadd.f32 %v1421_v62, %v735_v32  ;;  %v1410_v62 = vld [vmem:[#allocation3 + $0x68] sm:$0xff] }
 0x2e1   :  { %v1602_v36 = vld [vmem:[#allocation3 + $0x48] sm:$0xff] }
 0x2e2   :  { %v1594_v22 = vld [vmem:[#allocation3 + $0x8] sm:$0xff]  ;;  %1454 = vst.msk [vmem:[#allocation3 + $0x40] sm:$0xff] %vm3371_vm15, %v1437_v12  ;;  %vm3401_vm15 = vmmov %vm3333_vm0 }
 0x2e3   :  { %2034 = vlog2.f32 %v1594_v22  ;;  %v725_v42 = vpop.xlane.xlu1 %724  ;;  %v1577_v22 = vld [vmem:[#allocation2] sm:$0xff] }
 0x2e4   :  { %2036 = vpow2.f32 %v1373_v43  ;;  %v1432_v25 = vadd.f32 %v1416_v11, %v725_v42  ;;  %v3388_v43 = vld [vmem:[#allocation33_spill] sm:$0xff] }
 0x2e5   :  { %2038 = vpow2.f32 %v1391_v18  ;;  %v1593_v35 = vld [vmem:[#allocation3] sm:$0xff]  ;;  %v3389_v12 = vsub.f32 %v3387_v5, %v3388_v43  ;;  %v1692_v5 = vld [vmem:[#allocation4 + $0x18] sm:$0xff] }
 0x2e6   :  { %2040 = vlog2.f32 %v1593_v35  ;;  %1449 = vst.msk [vmem:[#allocation3 + $0x18] sm:$0xff] %vm3375_vm10, %v1432_v25  ;;  %v3075_v18 = vld [vmem:[#allocation5 + $0x20] sm:$0xff]  ;;  %vm3402_vm10 = vmmov %vm3333_vm0 }
 0x2e7   :  { %v741_v38 = vpop.xlane.xlu1 %740  ;;  %v723_v54 = vpop.xlane.xlu0 %722  ;;  %2042 = vpow2.f32 %v1389_v29  ;;  %v1393_v16 = vmul.f32 1.442695, %v3389_v12  ;;  %v1675_v29 = vmax.f32 %v3070_v23, 1.0 }
 0x2e8   :  { %v1440_v57 = vadd.f32 %v1424_v39, %v741_v38  ;;  %v1431_v24 = vadd.f32 %v1415_v46, %v723_v54  ;;  %2044 = vrcp.f32 %v1674_v59  ;;  %v1677_v59 = vmax.f32 %v3075_v18, 1.0 }
 0x2e9   :  { %2046 = vrcp.f32 %v1673_v3  ;;  %v1601_v47 = vld [vmem:[#allocation3 + $0x40] sm:$0xff] }
 0x2ea   :  { %1457 = vst.msk [vmem:[#allocation3 + $0x58] sm:$0xff] %vm3379_vm8, %v1440_v57  ;;  %2048 = vpow2.f32 %v1379_v17  ;;  %vm3403_vm8 = vmmov %vm3333_vm0 }
 0x2eb   :  { %1448 = vst.msk [vmem:[#allocation3 + $0x10] sm:$0xff] %vm3380_vm2, %v1431_v24  ;;  %v739_v55 = vpop.xlane.xlu0 %738  ;;  %vm3404_vm2 = vmmov %vm3333_vm0 }
 0x2ec   :  { %v1439_v50 = vadd.f32 %v1423_v41, %v739_v55 }
 0x2ed   :  { %v2035_v34 = vpop.eup %2034  ;;  %v1596_v21 = vld [vmem:[#allocation3 + $0x18] sm:$0xff] }
 0x2ee   :  { %v2037_v58 = vpop.eup %2036  ;;  %v1612_v37 = vmul.f32 0.6931472, %v2035_v34  ;;  %2050 = vlog2.f32 %v1596_v21  ;;  %1456 = vst.msk [vmem:[#allocation3 + $0x50] sm:$0xff] %vm3333_vm0, %v1439_v50  ;;  %v1580_v50 = vld [vmem:[#allocation2 + $0x18] sm:$0xff]  ;;  %v3089_v34 = vld [vmem:[#allocation5 + $0x28] sm:$0xff] }
 0x2ef   :  { %v2039_v0 = vpop.eup %2038  ;;  %v729_v20 = vpop.xlane.xlu1 %728  ;;  %2052 = vpow2.f32 %v1377_v13  ;;  %v1417_v42 = vmul.f32 %v2037_v58, %v1401_v26 }
 0x2f0   :  { %v2041_v32 = vpop.eup %2040  ;;  %v1642_v63 = vadd.f32 %v1612_v37, %v1578_v2  ;;  %v1434_v33 = vadd.f32 %v1418_v53, %v729_v20  ;;  %2054 = vpow2.f32 %v1395_v19  ;;  %v1426_v31 = vmul.f32 %v2039_v0, %v1410_v62  ;;  %v1412_v53 = vld [vmem:[#allocation3 + $0x78] sm:$0xff]  ;;  %v1403_v0 = vld [vmem:[#allocation3 + $0x30] sm:$0xff] }
 0x2f1   :  { %v1610_v15 = vmul.f32 0.6931472, %v2041_v32  ;;  %v2043_v56 = vpop.eup %2042  ;;  %v1604_v58 = vld [vmem:[#allocation3 + $0x58] sm:$0xff]  ;;  %v1681_v2 = vmax.f32 %v3087_v4, 1.0  ;;  %v3097_v20 = vld [vmem:[#allocation5 + $0x50] sm:$0xff]  ;;  %v1678_v32 = vmax.f32 %v3089_v34, 1.0 }
 0x2f2   :  { %v1595_v28 = vld [vmem:[#allocation3 + $0x10] sm:$0xff]  ;;  %v1706_v11 = vmul.f32 %v1658_v61, %v1642_v63  ;;  %1451 = vst.msk [vmem:[#allocation3 + $0x28] sm:$0xff] %vm3390_vm11, %v1434_v33  ;;  %v2045_v52 = vpop.eup %2044  ;;  %v1425_v57 = vmul.f32 %v2043_v56, %v1409_v49  ;;  %vm3405_vm11 = vmmov %vm3333_vm0 }
 0x2f3   :  { %v1641_v25 = vadd.f32 %v1610_v15, %v1577_v22  ;;  %2056 = vlog2.f32 %v1595_v28  ;;  %v745_v27 = vpop.xlane.xlu1 %744  ;;  %v727_v44 = vpop.xlane.xlu0 %726  ;;  %v3081_v61 = vld [vmem:[#allocation5 + $0x30] sm:$0xff] }
 0x2f4   :  { %v1722_v35 = vsub.f32 %v1690_v45, %v1706_v11  ;;  %v1442_v39 = vadd.f32 %v1426_v31, %v745_v27  ;;  %v1433_v46 = vadd.f32 %v1417_v42, %v727_v44  ;;  %2058 = vpow2.f32 %v1393_v16  ;;  %v2047_v54 = vpop.eup %2046  ;;  %v1579_v28 = vld [vmem:[#allocation2 + $0x10] sm:$0xff] }
 0x2f5   :  { %v1705_v38 = vmul.f32 %v3049_v7, %v1641_v25  ;;  %2060 = vrcp.f32 %v1676_v48  ;;  %v2049_v24 = vpop.eup %2048  ;;  %v1679_v41 = vmax.f32 %v3081_v61, 1.0  ;;  %v1683_v48 = vmax.f32 %v3097_v20, 1.0  ;;  %v1411_v56 = vld [vmem:[#allocation3 + $0x70] sm:$0xff] }
 0x2f6   :  { %v1740_v3 = vmul.f32 %v2045_v52, %v1722_v35  ;;  %1459 = vst.msk [vmem:[#allocation3 + $0x68] sm:$0xff] %vm3391_vm1, %v1442_v39  ;;  %2062 = vrcp.f32 %v1675_v29  ;;  %v1420_v9 = vmul.f32 %v2049_v24, %v1404_v51  ;;  %v1603_v29 = vld [vmem:[#allocation3 + $0x50] sm:$0xff]  ;;  %v1469_v35 = vld [vmem:[#allocation4 + $0x38] sm:$0xff]  ;;  %vm3406_vm1 = vmmov %vm3333_vm0 }
 0x2f7   :  { %1450 = vst.msk [vmem:[#allocation3 + $0x20] sm:$0xff] %vm3392_vm3, %v1433_v46  ;;  %v1721_v1 = vsub.f32 %v1689_v60, %v1705_v38  ;;  %v743_v30 = vpop.xlane.xlu0 %742  ;;  %2064 = vrcp.f32 %v1677_v59  ;;  %v3109_v46 = vld [vmem:[#allocation5 + $0x48] sm:$0xff]  ;;  %v1691_v60 = vld [vmem:[#allocation4 + $0x10] sm:$0xff]  ;;  %vm3407_vm3 = vmmov %vm3333_vm0 }
 0x2f8   :  { %v2051_v17 = vpop.eup %2050  ;;  %v1770_v55 = vmul.f32 -1.0, %v1740_v3  ;;  %v1441_v7 = vadd.f32 %v1425_v57, %v743_v30 }
 0x2f9   :  { %v1738_v8 = vmul.f32 %v2047_v54, %v1721_v1  ;;  %v1616_v10 = vmul.f32 0.6931472, %v2051_v17  ;;  %v1598_v40 = vld [vmem:[#allocation3 + $0x28] sm:$0xff]  ;;  %v2053_v13 = vpop.eup %2052 }
 0x2fa   :  { %1786 = vst.msk [vmem:[%s3226_s4 + $0x8] sm:$0xff] %vm3393_vm6, %v1770_v55  ;;  %2066 = vlog2.f32 %v1598_v40  ;;  %v2055_v6 = vpop.eup %2054  ;;  %v1419_v16 = vmul.f32 %v2053_v13, %v1403_v0  ;;  %v1582_v13 = vld [vmem:[#allocation2 + $0x28] sm:$0xff]  ;;  %vm3408_vm6 = vmmov %vm3333_vm0 }
 0x2fb   :  { %1458 = vst.msk [vmem:[#allocation3 + $0x60] sm:$0xff] %vm3394_vm9, %v1441_v7  ;;  %2068 = vlog2.f32 %v1602_v36  ;;  %v1769_v19 = vmul.f32 -1.0, %v1738_v8  ;;  %v1644_v21 = vadd.f32 %v1616_v10, %v1580_v50  ;;  %v733_v37 = vpop.xlane.xlu1 %732  ;;  %v1428_v12 = vmul.f32 %v2055_v6, %v1412_v53  ;;  %v1471_v8 = vld [vmem:[#allocation4 + $0x48] sm:$0xff]  ;;  %v1468_v10 = vld [vmem:[#allocation4 + $0x30] sm:$0xff]  ;;  %v3124_v50 = vld [vmem:[#allocation5 + $0x58] sm:$0xff] }
 0x2fc   :  { %2070 = vrcp.f32 %v1679_v41  ;;  %v1436_v62 = vadd.f32 %v1420_v9, %v733_v37  ;;  %v1682_v36 = vmax.f32 %v3109_v46, 1.0  ;;  %v3128_v37 = vld [vmem:[#allocation5 + $0x60] sm:$0xff]  ;;  %vm3409_vm9 = vmmov %vm3333_vm0 }
 0x2fd   :  { %v2057_v26 = vpop.eup %2056  ;;  %1785 = vst.msk [vmem:[%s3226_s4] sm:$0xff] %vm3395_vm12, %v1769_v19  ;;  %2072 = vlog2.f32 %v1601_v47  ;;  %v1708_v63 = vmul.f32 %v3067_v14, %v1644_v21  ;;  %v1606_v11 = vld [vmem:[#allocation3 + $0x68] sm:$0xff]  ;;  %v3107_v14 = vld [vmem:[#allocation5 + $0x38] sm:$0xff]  ;;  %vm3410_vm12 = vmmov %vm3333_vm0 }
 0x2fe   :  { %v1597_v33 = vld [vmem:[#allocation3 + $0x20] sm:$0xff]  ;;  %2074 = vlog2.f32 %v1604_v58  ;;  %v1614_v43 = vmul.f32 0.6931472, %v2057_v26  ;;  %1453 = vst.msk [vmem:[#allocation3 + $0x38] sm:$0xff] %vm3396_vm13, %v1436_v62  ;;  %v2059_v15 = vpop.eup %2058  ;;  %v1680_v3 = vmax.f32 %v3107_v14, 1.0  ;;  %v1473_v26 = vld [vmem:[#allocation4 + $0x58] sm:$0xff]  ;;  %vm3411_vm13 = vmmov %vm3333_vm0 }
 0x2ff   :  { %v1724_v22 = vsub.f32 %v1692_v5, %v1708_v63  ;;  %2076 = vlog2.f32 %v1597_v33  ;;  %v749_v31 = vpop.xlane.xlu1 %748  ;;  %v731_v42 = vpop.xlane.xlu0 %730  ;;  %v1427_v38 = vmul.f32 %v2059_v15, %v1411_v56  ;;  %v1684_v63 = vmax.f32 %v3124_v50, 1.0  ;;  %v3134_v15 = vld [vmem:[#allocation5 + $0x68] sm:$0xff] }
 0x300   :  { %v2061_v45 = vpop.eup %2060  ;;  %2078 = vrcp.f32 %v1681_v2  ;;  %v1643_v25 = vadd.f32 %v1614_v43, %v1579_v28  ;;  %v1444_v27 = vadd.f32 %v1428_v12, %v749_v31  ;;  %v1435_v44 = vadd.f32 %v1419_v16, %v731_v42  ;;  %v1470_v12 = vld [vmem:[#allocation4 + $0x40] sm:$0xff]  ;;  %v1694_v28 = vld [vmem:[#allocation4 + $0x28] sm:$0xff] }
 0x301   :  { %2080 = vrcp.f32 %v1678_v32  ;;  %v1744_v49 = vmul.f32 %v2061_v45, %v1724_v22  ;;  %v2063_v39 = vpop.eup %2062  ;;  %v1581_v31 = vld [vmem:[#allocation2 + $0x20] sm:$0xff]  ;;  %v1685_v42 = vmax.f32 %v3128_v37, 1.0 }
 0x302   :  { %v1707_v52 = vmul.f32 %v3070_v23, %v1643_v25  ;;  %2082 = vlog2.f32 %v1606_v11  ;;  %v1605_v59 = vld [vmem:[#allocation3 + $0x60] sm:$0xff]  ;;  %1461 = vst.msk [vmem:[#allocation3 + $0x78] sm:$0xff] %vm3397_vm5, %v1444_v27  ;;  %v3114_v54 = vpop.eup %2064  ;;  %v1586_v11 = vld [vmem:[#allocation2 + $0x48] sm:$0xff]  ;;  %vm3412_vm5 = vmmov %vm3333_vm0 }
 0x303   :  { %1452 = vst.msk [vmem:[#allocation3 + $0x30] sm:$0xff] %vm3398_vm14, %v1435_v44  ;;  %2084 = vrcp.f32 %v1683_v48  ;;  %v1772_v57 = vmul.f32 -1.0, %v1744_v49  ;;  %v781_v24 = vpop.xlane.xlu1 %780  ;;  %v747_v1 = vpop.xlane.xlu0 %746  ;;  %v1585_v49 = vld [vmem:[#allocation2 + $0x40] sm:$0xff]  ;;  %vm3413_vm14 = vmmov %vm3333_vm0 }
 0x304   :  { %v2067_v30 = vpop.eup %2066  ;;  %v1723_v51 = vsub.f32 %v1691_v60, %v1707_v52  ;;  %2086 = vlog2.f32 %v1603_v29  ;;  %v1485_v23 = vadd.f32 %v1469_v35, %v781_v24  ;;  %v1443_v17 = vadd.f32 %v1427_v38, %v747_v1  ;;  %v1472_v24 = vld [vmem:[#allocation4 + $0x50] sm:$0xff] }
 0x305   :  { %v2069_v41 = vpop.eup %2068  ;;  %1788 = vst.msk [vmem:[%s3226_s4 + $0x18] sm:$0xff] %vm3399_vm7, %v1772_v57  ;;  %v1620_v55 = vmul.f32 0.6931472, %v2067_v30  ;;  %2088 = vlog2.f32 %v1605_v59  ;;  %v1600_v7 = vld [vmem:[#allocation3 + $0x38] sm:$0xff]  ;;  %v1686_v38 = vmax.f32 %v3134_v15, 1.0  ;;  %v1475_v57 = vld [vmem:[#allocation4 + $0x68] sm:$0xff]  ;;  %vm3414_vm7 = vmmov %vm3333_vm0 }
 0x306   :  { %v3122_v40 = vpop.eup %2070  ;;  %v1742_v47 = vmul.f32 %v2063_v39, %v1723_v51  ;;  %2090 = vlog2.f32 %v1600_v7  ;;  %1501 = vst.msk [vmem:[#allocation4 + $0x38] sm:$0xff] %vm3400_vm4, %v1485_v23  ;;  %v1628_v53 = vmul.f32 0.6931472, %v2069_v41  ;;  %v1588_v30 = vld [vmem:[#allocation2 + $0x58] sm:$0xff]  ;;  %vm3415_vm4 = vmmov %vm3333_vm0 }
 0x307   :  { %1460 = vst.msk [vmem:[#allocation3 + $0x70] sm:$0xff] %vm3401_vm15, %v1443_v17  ;;  %v2073_v9 = vpop.eup %2072  ;;  %2092 = vrcp.f32 %v1680_v3  ;;  %v1646_v6 = vadd.f32 %v1620_v55, %v1582_v13  ;;  %v785_v19 = vpop.xlane.xlu1 %784  ;;  %v3146_v51 = vld [vmem:[#allocation5 + $0x78] sm:$0xff]  ;;  %v1693_v55 = vld [vmem:[#allocation4 + $0x20] sm:$0xff]  ;;  %vm3416_vm15 = vmmov %vm3333_vm0 }
 0x308   :  { %v779_v21 = vpop.xlane.xlu0 %778  ;;  %v2075_v58 = vpop.eup %2074  ;;  %v1771_v0 = vmul.f32 -1.0, %v1742_v47  ;;  %v1487_v2 = vadd.f32 %v1471_v8, %v785_v19  ;;  %2094 = vrcp.f32 %v1682_v36  ;;  %v1626_v48 = vmul.f32 0.6931472, %v2073_v9  ;;  %v3151_v36 = vld [vmem:[#allocation5 + $0x70] sm:$0xff] }
 0x309   :  { %v1484_v62 = vadd.f32 %v1468_v10, %v779_v21  ;;  %v2077_v32 = vpop.eup %2076  ;;  %v1710_v33 = vmul.f32 %v3089_v34, %v1646_v6  ;;  %v1608_v5 = vld [vmem:[#allocation3 + $0x78] sm:$0xff]  ;;  %v1632_v56 = vmul.f32 0.6931472, %v2075_v58  ;;  %v1650_v35 = vadd.f32 %v1628_v53, %v1586_v11  ;;  %v1474_v53 = vld [vmem:[#allocation4 + $0x60] sm:$0xff] }
 0x30a   :  { %v1599_v43 = vld [vmem:[#allocation3 + $0x30] sm:$0xff]  ;;  %v3132_v16 = vpop.eup %2078  ;;  %1787 = vst.msk [vmem:[%s3226_s4 + $0x10] sm:$0xff] %vm3402_vm10, %v1771_v0  ;;  %v1618_v22 = vmul.f32 0.6931472, %v2077_v32  ;;  %2096 = vlog2.f32 %v1608_v5  ;;  %v1649_v17 = vadd.f32 %v1626_v48, %v1585_v49  ;;  %v1477_v58 = vld [vmem:[#allocation4 + $0x78] sm:$0xff]  ;;  %vm3417_vm10 = vmmov %vm3333_vm0 }
 0x30b   :  { %1503 = vst.msk [vmem:[#allocation4 + $0x48] sm:$0xff] %vm3403_vm8, %v1487_v2  ;;  %v2081_v34 = vpop.eup %2080  ;;  %v1726_v45 = vsub.f32 %v1694_v28, %v1710_v33  ;;  %2098 = vlog2.f32 %v1599_v43  ;;  %v789_v25 = vpop.xlane.xlu1 %788  ;;  %v1652_v10 = vadd.f32 %v1632_v56, %v1588_v30  ;;  %v1688_v2 = vmax.f32 %v3146_v51, 1.0  ;;  %v1584_v33 = vld [vmem:[#allocation2 + $0x38] sm:$0xff]  ;;  %vm3418_vm8 = vmmov %vm3333_vm0 }
 0x30c   :  { %1500 = vst.msk [vmem:[#allocation4 + $0x30] sm:$0xff] %vm3404_vm2, %v1484_v62  ;;  %v783_v27 = vpop.xlane.xlu0 %782  ;;  %v2083_v44 = vpop.eup %2082  ;;  %v1645_v29 = vadd.f32 %v1618_v22, %v1581_v31  ;;  %v1489_v39 = vadd.f32 %v1473_v26, %v789_v25  ;;  %2100 = vrcp.f32 %v1684_v63  ;;  %v1590_v63 = vld [vmem:[#allocation2 + $0x68] sm:$0xff]  ;;  %vm3419_vm2 = vmmov %vm3333_vm0 }
 0x30d   :  { %v1486_v52 = vadd.f32 %v1470_v12, %v783_v27  ;;  %v3143_v59 = vpop.eup %2084  ;;  %v1748_v60 = vmul.f32 %v2081_v34, %v1726_v45  ;;  %v1636_v8 = vmul.f32 0.6931472, %v2083_v44  ;;  %v1713_v12 = vmul.f32 %v3087_v4, %v1649_v17  ;;  %v1587_v45 = vld [vmem:[#allocation2 + $0x50] sm:$0xff] }
 0x30e   :  { %v1607_v3 = vld [vmem:[#allocation3 + $0x70] sm:$0xff]  ;;  %v2087_v1 = vpop.eup %2086  ;;  %v1709_v23 = vmul.f32 %v3075_v18, %v1645_v29  ;;  %1505 = vst.msk [vmem:[#allocation4 + $0x58] sm:$0xff] %vm3333_vm0, %v1489_v39  ;;  %v1714_v18 = vmul.f32 %v3109_v46, %v1650_v35  ;;  %v1687_v46 = vmax.f32 %v3151_v36, 1.0  ;;  %v1716_v34 = vmul.f32 %v3124_v50, %v1652_v10  ;;  %v1592_v50 = vld [vmem:[#allocation2 + $0x78] sm:$0xff] }
 0x30f   :  { %2102 = vlog2.f32 %v1607_v3  ;;  %1502 = vst.msk [vmem:[#allocation4 + $0x40] sm:$0xff] %vm3405_vm11, %v1486_v52  ;;  %v2089_v41 = vpop.eup %2088  ;;  %v1774_v7 = vmul.f32 -1.0, %v1748_v60  ;;  %v793_v13 = vpop.xlane.xlu1 %792  ;;  %v1630_v62 = vmul.f32 0.6931472, %v2087_v1  ;;  %v1654_v11 = vadd.f32 %v1636_v8, %v1590_v63  ;;  %v1589_v60 = vld [vmem:[#allocation2 + $0x60] sm:$0xff]  ;;  %vm3420_vm11 = vmmov %vm3333_vm0 }
 0x310   :  { %2104 = vrcp.f32 %v1685_v42  ;;  %v787_v47 = vpop.xlane.xlu0 %786  ;;  %v2091_v9 = vpop.eup %2090  ;;  %v1725_v6 = vsub.f32 %v1693_v55, %v1709_v23  ;;  %v1491_v19 = vadd.f32 %v1475_v57, %v793_v13  ;;  %v1634_v48 = vmul.f32 0.6931472, %v2089_v41  ;;  %v1696_v57 = vld [vmem:[#allocation4 + $0x38] sm:$0xff]  ;;  %v1583_v23 = vld [vmem:[#allocation2 + $0x30] sm:$0xff] }
 0x311   :  { %v1488_v21 = vadd.f32 %v1472_v24, %v787_v47  ;;  %v2093_v0 = vpop.eup %2092  ;;  %2106 = vrcp.f32 %v1686_v38  ;;  %1790 = vst.msk [vmem:[%s3226_s4 + $0x28] sm:$0xff] %vm3406_vm1, %v1774_v7  ;;  %v1624_v26 = vmul.f32 0.6931472, %v2091_v9  ;;  %v1651_v52 = vadd.f32 %v1630_v62, %v1587_v45  ;;  %v1476_v38 = vld [vmem:[#allocation4 + $0x70] sm:$0xff]  ;;  %vm3421_vm1 = vmmov %vm3333_vm0 }
 0x312   :  { %v1698_v32 = vld [vmem:[#allocation4 + $0x48] sm:$0xff]  ;;  %v1746_v5 = vmul.f32 %v3114_v54, %v1725_v6  ;;  %1507 = vst.msk [vmem:[#allocation4 + $0x68] sm:$0xff] %vm3407_vm3, %v1491_v19  ;;  %v2095_v28 = vpop.eup %2094  ;;  %2108 = vrcp.f32 %v1688_v2  ;;  %v1718_v41 = vmul.f32 %v3134_v15, %v1654_v11  ;;  %v1653_v7 = vadd.f32 %v1634_v48, %v1589_v60 }
 0x313   :  { %v1730_v43 = vsub.f32 %v1698_v32, %v1714_v18  ;;  %1504 = vst.msk [vmem:[#allocation4 + $0x50] sm:$0xff] %vm3408_vm6, %v1488_v21  ;;  %v1648_v22 = vadd.f32 %v1624_v26, %v1584_v33  ;;  %v797_v31 = vpop.xlane.xlu1 %796  ;;  %2110 = vrcp.f32 %v1687_v46  ;;  %v1715_v15 = vmul.f32 %v3097_v20, %v1651_v52  ;;  %v1591_v33 = vld [vmem:[#allocation2 + $0x70] sm:$0xff] }
 0x314   :  { %v791_v42 = vpop.xlane.xlu0 %790  ;;  %v2097_v56 = vpop.eup %2096  ;;  %v1773_v25 = vmul.f32 -1.0, %v1746_v5  ;;  %v1493_v54 = vadd.f32 %v1477_v58, %v797_v31  ;;  %v1717_v46 = vmul.f32 %v3128_v37, %v1653_v7 }
 0x315   :  { %v1756_v27 = vmul.f32 %v2095_v28, %v1730_v43  ;;  %v1490_v44 = vadd.f32 %v1474_v53, %v791_v42  ;;  %v2099_v49 = vpop.eup %2098  ;;  %v1640_v4 = vmul.f32 0.6931472, %v2097_v56  ;;  %v1712_v29 = vmul.f32 %v3107_v14, %v1648_v22  ;;  %v1700_v35 = vld [vmem:[#allocation4 + $0x58] sm:$0xff] }
 0x316   :  { %v1697_v39 = vld [vmem:[#allocation4 + $0x40] sm:$0xff]  ;;  %1789 = vst.msk [vmem:[%s3226_s4 + $0x20] sm:$0xff] %vm3409_vm9, %v1773_v25  ;;  %v1622_v3 = vmul.f32 0.6931472, %v2099_v49  ;;  %v1732_v1 = vsub.f32 %v1700_v35, %v1716_v34  ;;  %v2101_v14 = vpop.eup %2100 }
 0x317   :  { %v1778_v24 = vmul.f32 -1.0, %v1756_v27  ;;  %v1729_v30 = vsub.f32 %v1697_v39, %v1713_v12  ;;  %1509 = vst.msk [vmem:[#allocation4 + $0x78] sm:$0xff] %vm3410_vm12, %v1493_v54  ;;  %v1728_v17 = vsub.f32 %v1696_v57, %v1712_v29  ;;  %v1656_v55 = vadd.f32 %v1640_v4, %v1592_v50 }
 0x318   :  { %1506 = vst.msk [vmem:[#allocation4 + $0x60] sm:$0xff] %vm3411_vm13, %v1490_v44  ;;  %v795_v8 = vpop.xlane.xlu0 %794  ;;  %v1647_v13 = vadd.f32 %v1622_v3, %v1583_v23  ;;  %v1760_v47 = vmul.f32 %v2101_v14, %v1732_v1 }
 0x319   :  { %v2103_v10 = vpop.eup %2102  ;;  %1794 = vst.msk [vmem:[%s3226_s4 + $0x48] sm:$0xff] %vm3412_vm5, %v1778_v24  ;;  %v1754_v9 = vmul.f32 %v3132_v16, %v1729_v30  ;;  %v1492_v6 = vadd.f32 %v1476_v38, %v795_v8  ;;  %v1752_v19 = vmul.f32 %v2093_v0, %v1728_v17  ;;  %v1702_v58 = vld [vmem:[#allocation4 + $0x68] sm:$0xff]  ;;  %v1695_v16 = vld [vmem:[#allocation4 + $0x30] sm:$0xff]  ;;  %v1720_v20 = vmul.f32 %v3146_v51, %v1656_v55 }
 0x31a   :  { %v2105_v18 = vpop.eup %2104  ;;  %v1638_v21 = vmul.f32 0.6931472, %v2103_v10  ;;  %v1699_v53 = vld [vmem:[#allocation4 + $0x50] sm:$0xff]  ;;  %v1711_v2 = vmul.f32 %v3081_v61, %v1647_v13  ;;  %v1780_v62 = vmul.f32 -1.0, %v1760_v47  ;;  %v1734_v32 = vsub.f32 %v1702_v58, %v1718_v41 }
 0x31b   :  { %v1777_v26 = vmul.f32 -1.0, %v1754_v9  ;;  %1508 = vst.msk [vmem:[#allocation4 + $0x70] sm:$0xff] %vm3413_vm14, %v1492_v6  ;;  %v2107_v63 = vpop.eup %2106  ;;  %v1776_v5 = vmul.f32 -1.0, %v1752_v19  ;;  %v1731_v43 = vsub.f32 %v1699_v53, %v1715_v15 }
 0x31c   :  { %v1727_v0 = vsub.f32 %v1695_v16, %v1711_v2  ;;  %1796 = vst.msk [vmem:[%s3226_s4 + $0x58] sm:$0xff] %vm3414_vm7, %v1780_v62  ;;  %v1764_v61 = vmul.f32 %v2107_v63, %v1734_v32  ;;  %v1655_v12 = vadd.f32 %v1638_v21, %v1591_v33  ;;  %v2109_v42 = vpop.eup %2108 }
 0x31d   :  { %1793 = vst.msk [vmem:[%s3226_s4 + $0x40] sm:$0xff] %vm3415_vm4, %v1777_v26  ;;  %v1758_v37 = vmul.f32 %v3143_v59, %v1731_v43  ;;  %v2111_v49 = vpop.eup %2110 }
 0x31e   :  { %1792 = vst.msk [vmem:[%s3226_s4 + $0x38] sm:$0xff] %vm3416_vm15, %v1776_v5  ;;  %v1704_v28 = vld [vmem:[#allocation4 + $0x78] sm:$0xff]  ;;  %v1750_v22 = vmul.f32 %v3122_v40, %v1727_v0  ;;  %v1782_v34 = vmul.f32 -1.0, %v1764_v61  ;;  %v1719_v27 = vmul.f32 %v3151_v36, %v1655_v12 }
 0x31f   :  { %v1701_v48 = vld [vmem:[#allocation4 + $0x60] sm:$0xff]  ;;  %v1736_v11 = vsub.f32 %v1704_v28, %v1720_v20  ;;  %v1779_v56 = vmul.f32 -1.0, %v1758_v37 }
 0x320   :  { %v1733_v31 = vsub.f32 %v1701_v48, %v1717_v46  ;;  %v1775_v45 = vmul.f32 -1.0, %v1750_v22  ;;  %1798 = vst.msk [vmem:[%s3226_s4 + $0x68] sm:$0xff] %vm3417_vm10, %v1782_v34 }
 0x321   :  { %v1768_v51 = vmul.f32 %v2109_v42, %v1736_v11  ;;  %1795 = vst.msk [vmem:[%s3226_s4 + $0x50] sm:$0xff] %vm3418_vm8, %v1779_v56 }
 0x322   :  { %v1762_v25 = vmul.f32 %v2105_v18, %v1733_v31  ;;  %v1703_v40 = vld [vmem:[#allocation4 + $0x70] sm:$0xff]  ;;  %1791 = vst.msk [vmem:[%s3226_s4 + $0x30] sm:$0xff] %vm3419_vm2, %v1775_v45 }
 0x323   :  { %v1784_v59 = vmul.f32 -1.0, %v1768_v51  ;;  %v1735_v44 = vsub.f32 %v1703_v40, %v1719_v27 }
 0x324   :  { %v1781_v54 = vmul.f32 -1.0, %v1762_v25 }
 0x325   :  { %1800 = vst.msk [vmem:[%s3226_s4 + $0x78] sm:$0xff] %vm3333_vm0, %v1784_v59  ;;  %v1766_v36 = vmul.f32 %v2111_v49, %v1735_v44 }
 0x326   :  { %1797 = vst.msk [vmem:[%s3226_s4 + $0x60] sm:$0xff] %vm3420_vm11, %v1781_v54 }
 0x327   :  { %v1783_v4 = vmul.f32 -1.0, %v1766_v36 }
 0x329   :  { %1799 = vst.msk [vmem:[%s3226_s4 + $0x70] sm:$0xff] %vm3421_vm1, %v1783_v4 }
 0x32a   :  { %1805 = vsyncpa [#allocation7], 1 }

</bundles_post_ra>
